<compile_context>
chip_gen: v5e
topology: v5e:2x2
jax: 0.10.0
libtpu: 0.0.40
codegen_flags: <defaults>
</compile_context>

<pallas_src>
import jax
import jax.numpy as jnp
from jax import lax
from jax.experimental import pallas as pl
from jax.experimental.pallas import tpu as pltpu


def _round_up(n, m):
    return (n + m - 1) // m * m


def _best_unroll(t):
    for u in (8, 4, 2):
        if t % u == 0:
            return u
    return 1


# ----------------------------- Pallas bi-LSTM kernel -----------------------------
def _bilstm_kernel(x_ref, wih_ref, m_ref, b_ref, whr_ref, out_ref,
                   xw_ref, hraw_ref, h_ref, c_ref):
    """One projected-LSTM direction (outer grid axis, parallel) over one sequence
    chunk (inner grid axis, arbitrary; recurrent state carried in h_ref/c_ref).

    Shapes (lane dims padded to 128; gates 128-aligned; Bp = sublane-padded batch):
      x_ref   : (T*Bp, Ep)    bf16  chunk of sequence-major, flattened input (shared)
      wih_ref : (1, Ep, 4Hp)  bf16  W_ih^T, gate-padded, i/f/o blocks pre-scaled 0.5
      m_ref   : (1, Hp, 4Hp)  bf16  fused W_hr^T @ W_hh^T, gate-padded, i/f/o *0.5
      b_ref   : (1, 1, 4Hp)   f32   b_ih + b_hh, gate-padded, i/f/o *0.5
      whr_ref : (1, Hp, Ep)   bf16  W_hr^T (output projection)
      out_ref : (1, T*Bp, Ep) bf16
      xw_ref  : (T*Bp, 4Hp)   bf16  scratch: input projection (+bias) for the chunk
      hraw_ref: (T*Bp, Hp)    bf16  scratch: unprojected hidden state for the chunk
      h_ref   : (Bp, Hp)      bf16  carried h_raw across chunks
      c_ref   : (Bp, Hp)      f32   carried cell state across chunks
    """
    Bp, Hp = h_ref.shape
    rows, _ = x_ref.shape
    T = rows // Bp

    # (0) Zero the recurrent carry at the first chunk of each direction.
    @pl.when(pl.program_id(1) == 0)
    def _():
        h_ref[...] = jnp.zeros_like(h_ref)
        c_ref[...] = jnp.zeros_like(c_ref)

    # (1) Input projection (+bias) for the whole chunk in one MXU matmul.
    xw = jnp.dot(x_ref[...], wih_ref[0], preferred_element_type=jnp.float32)
    xw_ref[...] = (xw + b_ref[0]).astype(xw_ref.dtype)

    # (2) Serial recurrence over the chunk.  Output projection is hoisted out of the
    #     loop: h0 = 0 makes the fused M = W_hr^T @ W_hh^T act on unprojected h_raw.
    #     i/f/o pre-activations arrive pre-scaled by 0.5, so one tanh over all gates
    #     gives sigmoid via 0.5*(tanh(x/2)+1) and tanh(x) for the candidate gate.
    def step(t, carry):
        h_bf, c = carry                                    # (Bp,Hp) bf16 / f32
        row = pl.multiple_of(t * Bp, Bp)
        g = (jnp.dot(h_bf, m_ref[0], preferred_element_type=jnp.float32)
             + xw_ref[pl.ds(row, Bp), :])                  # (Bp, 4Hp) f32
        tg = jnp.tanh(g)                                   # single EUP pass per step
        i = tg[:, 0 * Hp:1 * Hp] * 0.5 + 0.5
        f = tg[:, 1 * Hp:2 * Hp] * 0.5 + 0.5
        gg = tg[:, 2 * Hp:3 * Hp]
        o = tg[:, 3 * Hp:4 * Hp] * 0.5 + 0.5
        c = f * c + i * gg
        h_bf = (o * jnp.tanh(c)).astype(jnp.bfloat16)      # cast once; store + next matmul
        hraw_ref[pl.ds(row, Bp), :] = h_bf
        return h_bf, c

    h_fin, c_fin = lax.fori_loop(0, T, step, (h_ref[...], c_ref[...]),
                                 unroll=_best_unroll(T))
    h_ref[...] = h_fin
    c_ref[...] = c_fin

    # (3) Output projection for the whole chunk in one MXU matmul.
    out = jnp.dot(hraw_ref[...], whr_ref[0], preferred_element_type=jnp.float32)
    out_ref[0] = out.astype(out_ref.dtype)


# ----------------------------- weight preparation -------------------------------
def _gate_pad(w, H, Hp):
    """Pad the trailing (4H) gate axis to 4*Hp, placing each H-wide gate block at a
    128-aligned Hp-wide slot (zeros elsewhere)."""
    if Hp == H:
        return w
    blocks = jnp.split(w, 4, axis=-1)
    pad = [(0, 0)] * (w.ndim - 1) + [(0, Hp - H)]
    return jnp.concatenate([jnp.pad(blk, pad) for blk in blocks], axis=-1)


def _scale_ifo(w, Hp):
    """Scale the i, f, o gate blocks (not g) of a gate-padded (..., 4Hp) array by 0.5.
    Exact (power-of-two), so numerics match the unscaled-sigmoid formulation."""
    scale = jnp.concatenate([jnp.full((Hp,), 0.5, w.dtype), jnp.full((Hp,), 0.5, w.dtype),
                             jnp.ones((Hp,), w.dtype), jnp.full((Hp,), 0.5, w.dtype)])
    return w * scale


def _prep_direction(p, E, H, Ep, Hp):
    """Transpose / fuse / pad / pre-scale one LSTM's weights. Padding exactness:
    padded gate lanes see zero pre-activations -> i=f=o=0.5, g=0 -> padded cell and
    hidden lanes stay identically zero; padded W_hr^T rows/cols are zero."""
    wih_t = jnp.pad(_gate_pad(p["wih"].T, H, Hp), ((0, Ep - E), (0, 0)))    # (Ep, 4Hp)
    m = p["whr"].T @ p["whh"].T                                             # (H, 4H)
    m = jnp.pad(_gate_pad(m, H, Hp), ((0, Hp - H), (0, 0)))                 # (Hp, 4Hp)
    b = _gate_pad((p["bih"] + p["bhh"])[None, :], H, Hp)                    # (1, 4Hp)
    wih_t, m, b = _scale_ifo(wih_t, Hp), _scale_ifo(m, Hp), _scale_ifo(b, Hp)
    whr_t = jnp.pad(p["whr"].T, ((0, Hp - H), (0, Ep - E)))                 # (Hp, Ep)
    return (wih_t.astype(jnp.bfloat16), m.astype(jnp.bfloat16),
            b.astype(jnp.float32), whr_t.astype(jnp.bfloat16))


# ----------------------------- VMEM sizing / chunking ---------------------------
def _vmem_need_bytes(T, Bp, Ep, Hp):
    H4p = 4 * Hp
    rows = T * Bp
    x_io = 2 * rows * Ep * 2 + 2 * rows * Ep * 2                     # x + out (bf16, x2 buf)
    wts = 2 * (Ep * H4p * 2 + Hp * H4p * 2 + H4p * 4 + Hp * Ep * 2)  # weights (x2 buf)
    scratch = rows * H4p * 2 + rows * Hp * 2 + Bp * Hp * (2 + 4)     # xw, hraw, h, c
    return x_io + wts + scratch


def _pick_chunk(S, Bp, Ep, Hp, vmem_budget=40 << 20):
    """Largest chunk that divides S, keeps per-chunk VMEM need under budget
    (fits v7x's 64 MiB/TC with headroom), and stays <= 256 steps."""
    H4p = 4 * Hp
    fixed = 2 * (Ep * H4p * 2 + Hp * H4p * 2 + H4p * 4 + Hp * Ep * 2) + Bp * Hp * 6
    per_row = Bp * (2 * Ep * 2 + 2 * Ep * 2 + H4p * 2 + Hp * 2)
    budget_rows = (vmem_budget - fixed) // per_row if vmem_budget > fixed else 1
    t = max(1, min(S, 256, int(budget_rows)))
    while S % t:
        t -= 1
    return int(t)


# ----------------------------- bi-LSTM layer wrapper -----------------------------
def bilstm_layer(x, p_dir0, p_dir1, s_chunk=None):
    """Run two independent projected LSTMs (PyTorch gate order i,f,g,o, zero initial
    state, batch_first) over the SAME input x in one pallas_call with
    grid=(2 directions, n_chunks)."""
    B, S, E = x.shape
    H = p_dir0["whr"].shape[1]
    Ep, Hp = _round_up(E, 128), _round_up(H, 128)
    Bp = _round_up(B, 16)          # sublane padding (16 covers bf16 packing)
    H4p = 4 * Hp

    if s_chunk is None:
        s_chunk = _pick_chunk(S, Bp, Ep, Hp)
    s_chunk = max(1, min(int(s_chunk), S))
    while S % s_chunk:
        s_chunk -= 1
    n_chunks = S // s_chunk
    rows = s_chunk * Bp

    w = [_prep_direction(p, E, H, Ep, Hp) for p in (p_dir0, p_dir1)]
    wih = jnp.stack([w[0][0], w[1][0]])   # (2, Ep, 4Hp) bf16
    m = jnp.stack([w[0][1], w[1][1]])     # (2, Hp, 4Hp) bf16
    b = jnp.stack([w[0][2], w[1][2]])     # (2, 1, 4Hp)  f32
    whr = jnp.stack([w[0][3], w[1][3]])   # (2, Hp, Ep)  bf16

    # Sequence-major, batch/lane padded, bf16, flattened to 2-D (S*Bp, Ep): every
    # kernel access is a lane-dense 2-D tile, no in-kernel reshapes/relayouts.
    x_sm = jnp.pad(jnp.swapaxes(x, 0, 1), ((0, 0), (0, Bp - B), (0, Ep - E)))
    x_sm = x_sm.astype(jnp.bfloat16).reshape(S * Bp, Ep)

    need = _vmem_need_bytes(s_chunk, Bp, Ep, Hp)
    limit = min(max(2 * need, 32 << 20), 100 << 20)
    assert need <= limit, "per-chunk VMEM need exceeds limit; shrink s_chunk"

    out = pl.pallas_call(
        _bilstm_kernel,
        out_shape=jax.ShapeDtypeStruct((2, S * Bp, Ep), jnp.bfloat16),
        grid_spec=pltpu.PrefetchScalarGridSpec(
            num_scalar_prefetch=0,
            grid=(2, n_chunks),
            in_specs=[
                pl.BlockSpec((rows, Ep), lambda d, k: (k, 0)),        # x chunk (shared)
                pl.BlockSpec((1, Ep, H4p), lambda d, k: (d, 0, 0)),   # W_ih^T
                pl.BlockSpec((1, Hp, H4p), lambda d, k: (d, 0, 0)),   # fused M
                pl.BlockSpec((1, 1, H4p), lambda d, k: (d, 0, 0)),    # bias
                pl.BlockSpec((1, Hp, Ep), lambda d, k: (d, 0, 0)),    # W_hr^T
            ],
            out_specs=pl.BlockSpec((1, rows, Ep), lambda d, k: (d, k, 0)),
            scratch_shapes=[
                pltpu.VMEM((rows, H4p), jnp.bfloat16),   # xw (chunk)
                pltpu.VMEM((rows, Hp), jnp.bfloat16),    # h_raw (chunk)
                pltpu.VMEM((Bp, Hp), jnp.bfloat16),      # carried h_raw
                pltpu.VMEM((Bp, Hp), jnp.float32),       # carried cell state
            ]),
        compiler_params=pltpu.CompilerParams(
            dimension_semantics=("parallel", "arbitrary"),
            vmem_limit_bytes=int(limit)),
    )(x_sm, wih, m, b, whr)

    out = out.reshape(2, S, Bp, Ep)[:, :, :B, :E].astype(jnp.float32)
    out = jnp.swapaxes(out, 1, 2)   # (2, B, S, E)
    return out[0], out[1]


# ----------------------------- WordLSTM wrapper --------------------------------
def init_word_lstm_params(key, d_emb_word, d_lstm, n_layers=2):
    H4 = 4 * d_lstm
    params = {"forw": [], "back": []}
    for name in ("forw", "back"):
        for _ in range(n_layers):
            key, k0, k1, k2, k3, k4 = jax.random.split(key, 6)
            u = lambda k, shape: jax.random.uniform(k, shape, jnp.float32, -0.1, 0.1)
            params[name].append(dict(
                wih=u(k0, (H4, d_emb_word)),      # weight_ih
                whh=u(k1, (H4, d_emb_word)),      # weight_hh (acts on projected h)
                bih=u(k2, (H4,)),
                bhh=u(k3, (H4,)),
                whr=u(k4, (d_emb_word, d_lstm)),  # weight_hr (projection)
            ))
    return params


def _combine_forward_and_backward(forw_out, back_out):
    f = jnp.roll(forw_out, 1, axis=1).at[:, 0, :].set(0.0)
    b = jnp.roll(back_out, 1, axis=1).at[:, 0, :].set(0.0)
    return f, jnp.flip(b, axis=1)


def word_lstm_forward(x, params, n_layers=2, return_all_states=False):
    context = [x]
    for l in range(n_layers):
        # Mirrors torch's `(back, forw) = zip(forw_lstm, back_lstm)[l]` unpacking:
        # forw_out uses back_lstm[l], back_out uses forw_lstm[l]; both run on the
        # ORIGINAL x each layer (exactly what the reference forward does).
        forw_out, back_out = bilstm_layer(x, params["back"][l], params["forw"][l])
        context.extend(_combine_forward_and_backward(forw_out, back_out))
        # TODO(synk): dropout + residual (forw_x/back_x) branch is dead code w.r.t.
        # the returned tensors in the reference forward, so it is omitted.
    if return_all_states:
        return jnp.stack(context, axis=0)             # (1+2L, B, S, E)
    return jnp.concatenate(context[-2:], axis=-1)     # (B, S, 2E)


# ----------------------------- pure-JAX reference ------------------------------
def _lstm_ref(x, wih, whh, bih, bhh, whr):
    B, S, E = x.shape
    H = whr.shape[1]

    def step(carry, xt):
        h, c = carry
        g = xt @ wih.T + h @ whh.T + bih + bhh
        i = jax.nn.sigmoid(g[:, :H])
        f = jax.nn.sigmoid(g[:, H:2 * H])
        gg = jnp.tanh(g[:, 2 * H:3 * H])
        o = jax.nn.sigmoid(g[:, 3 * H:])
        c = f * c + i * gg
        h = (o * jnp.tanh(c)) @ whr.T
        return (h, c), h

    (_, _), ys = lax.scan(step, (jnp.zeros((B, E)), jnp.zeros((B, H))),
                          jnp.swapaxes(x, 0, 1))
    return jnp.swapaxes(ys, 0, 1)


# ----------------------------------- main --------------------------------------
if __name__ == "__main__":
    B, S, E, H, L = 2, 8, 32, 64, 2    # batch, seq, d_emb_word, d_lstm, n_lstm_layers

    key = jax.random.PRNGKey(0)
    kx, kp = jax.random.split(key)
    x = jax.random.normal(kx, (B, S, E), jnp.float32)
    params = init_word_lstm_params(kp, E, H, L)

    # Sanity-check the chunked kernel (s_chunk=4 -> 2 chunks per direction, so the
    # cross-chunk h/c carry path is exercised) against the pure-JAX scan reference.
    # Reference uses bf16-rounded weights/input; tolerance loosened for bf16 matmul
    # inputs / bf16 xw + output storage with f32 accumulation.
    p0, p1 = params["back"][0], params["forw"][0]
    y0_k, y1_k = bilstm_layer(x, p0, p1, s_chunk=4)
    rnd = lambda a: a.astype(jnp.bfloat16).astype(jnp.float32)
    x_r = rnd(x)
    y0_r = _lstm_ref(x_r, rnd(p0["wih"]), rnd(p0["whh"]), p0["bih"], p0["bhh"], rnd(p0["whr"]))
    y1_r = _lstm_ref(x_r, rnd(p1["wih"]), rnd(p1["whh"]), p1["bih"], p1["bhh"], rnd(p1["whr"]))
    jax.block_until_ready((y0_k, y1_k, y0_r, y1_r))
    assert jnp.allclose(y0_k, y0_r, atol=3e-2, rtol=3e-2), "forward-dir LSTM kernel mismatch"
    assert jnp.allclose(y1_k, y1_r, atol=3e-2, rtol=3e-2), "backward-dir LSTM kernel mismatch"

    # Full WordLSTM forward (both return modes), default chunking.
    fwd = jax.jit(word_lstm_forward, static_argnames=("n_layers", "return_all_states"))
    out_last = fwd(x, params, n_layers=L, return_all_states=False)
    out_all = fwd(x, params, n_layers=L, return_all_states=True)
    jax.block_until_ready((out_last, out_all))
    assert out_last.shape == (B, S, 2 * E)
    assert out_all.shape == (1 + 2 * L, B, S, E)

    print("KERNEL_OK")
</pallas_src>

<mosaic_0001>
module attributes {stable_mosaic.version = 11 : i64} {
  func.func @_bilstm_kernel(%arg0: i32, %arg1: i32, %arg2: memref<64x128xbf16, #tpu.memory_space<vmem>>, %arg3: memref<1x128x512xbf16, #tpu.memory_space<vmem>>, %arg4: memref<1x128x512xbf16, #tpu.memory_space<vmem>>, %arg5: memref<1x1x512xf32, #tpu.memory_space<vmem>>, %arg6: memref<1x128x128xbf16, #tpu.memory_space<vmem>>, %arg7: memref<1x64x128xbf16, #tpu.memory_space<vmem>>, %arg8: memref<64x512xbf16, #tpu.memory_space<vmem>>, %arg9: memref<64x128xbf16, #tpu.memory_space<vmem>>, %arg10: memref<16x128xbf16, #tpu.memory_space<vmem>>, %arg11: memref<16x128xf32, #tpu.memory_space<vmem>>) attributes {dimension_semantics = [#tpu.dimension_semantics<parallel>, #tpu.dimension_semantics<arbitrary>], iteration_bounds = array<i64: 2, 2>, scalar_prefetch = 0 : i64, scratch_operands = 4 : i64, tpu.core_type = #tpu.core_type<tc>, window_params = [{transform_indices = @transform_0, window_bounds = array<i64: 64, 128>}, {transform_indices = @transform_1, window_bounds = array<i64: 1, 128, 512>}, {transform_indices = @transform_2, window_bounds = array<i64: 1, 128, 512>}, {transform_indices = @transform_3, window_bounds = array<i64: 1, 1, 512>}, {transform_indices = @transform_4, window_bounds = array<i64: 1, 128, 128>}, {transform_indices = @transform_5, window_bounds = array<i64: 1, 64, 128>}]} {
    %c0_i32 = arith.constant 0 : i32
    %0 = arith.cmpi eq, %arg1, %c0_i32 : i32
    %1 = arith.extui %0 : i1 to i32
    %c0_i32_0 = arith.constant 0 : i32
    %2 = arith.cmpi ne, %1, %c0_i32_0 : i32
    scf.if %2 {
      %cst_79 = arith.constant 0.000000e+00 : bf16
      %161 = vector.broadcast %cst_79 : bf16 to vector<16x128xbf16>
      %c0_80 = arith.constant 0 : index
      %c0_81 = arith.constant 0 : index
      %162 = vector.load %arg10[%c0_80, %c0_81] : memref<16x128xbf16, #tpu.memory_space<vmem>>, vector<16x128xbf16>
      tpu.vector_store %arg10[%c0_80, %c0_81], %161 {strides = array<i32>} : memref<16x128xbf16, #tpu.memory_space<vmem>>, vector<16x128xbf16>,
      %cst_82 = arith.constant 0.000000e+00 : f32
      %163 = vector.broadcast %cst_82 : f32 to vector<16x128xf32>
      %c0_83 = arith.constant 0 : index
      %c0_84 = arith.constant 0 : index
      %164 = vector.load %arg11[%c0_83, %c0_84] : memref<16x128xf32, #tpu.memory_space<vmem>>, vector<16x128xf32>
      tpu.vector_store %arg11[%c0_83, %c0_84], %163 {strides = array<i32>} : memref<16x128xf32, #tpu.memory_space<vmem>>, vector<16x128xf32>,
    } else {
    }
    %c0 = arith.constant 0 : index
    %c0_1 = arith.constant 0 : index
    %3 = vector.load %arg2[%c0, %c0_1] : memref<64x128xbf16, #tpu.memory_space<vmem>>, vector<64x128xbf16>
    %c0_2 = arith.constant 0 : index
    %c0_3 = arith.constant 0 : index
    %c0_4 = arith.constant 0 : index
    %4 = vector.load %arg3[%c0_2, %c0_3, %c0_4] : memref<1x128x512xbf16, #tpu.memory_space<vmem>>, vector<1x128x512xbf16>
    %5 = vector.shape_cast %4 : vector<1x128x512xbf16> to vector<128x512xbf16>
    %cst = arith.constant dense<0.000000e+00> : vector<64x512xf32>
    %6 = tpu.matmul %3, %5, %cst {dimension_numbers = #tpu.dot_dimension_numbers<[1], [0], [0], [1], [0, 0, 1, 1], [], []>} : vector<64x128xbf16>, vector<128x512xbf16>, vector<64x512xf32> -> vector<64x512xf32>
    %c0_5 = arith.constant 0 : index
    %c0_6 = arith.constant 0 : index
    %c0_7 = arith.constant 0 : index
    %7 = vector.load %arg5[%c0_5, %c0_6, %c0_7] : memref<1x1x512xf32, #tpu.memory_space<vmem>>, vector<1x1x512xf32>
    %8 = vector.shape_cast %7 : vector<1x1x512xf32> to vector<1x512xf32>
    %9 = vector.broadcast %8 : vector<1x512xf32> to vector<64x512xf32>
    %10 = arith.addf %6, %9 : vector<64x512xf32>
    %11 = arith.truncf %10 : vector<64x512xf32> to vector<64x512xbf16>
    %c0_8 = arith.constant 0 : index
    %c0_9 = arith.constant 0 : index
    %12 = vector.load %arg8[%c0_8, %c0_9] : memref<64x512xbf16, #tpu.memory_space<vmem>>, vector<64x512xbf16>
    tpu.vector_store %arg8[%c0_8, %c0_9], %11 {strides = array<i32>} : memref<64x512xbf16, #tpu.memory_space<vmem>>, vector<64x512xbf16>,
    %c0_10 = arith.constant 0 : index
    %c0_11 = arith.constant 0 : index
    %13 = vector.load %arg10[%c0_10, %c0_11] : memref<16x128xbf16, #tpu.memory_space<vmem>>, vector<16x128xbf16>
    %c0_12 = arith.constant 0 : index
    %c0_13 = arith.constant 0 : index
    %14 = vector.load %arg11[%c0_12, %c0_13] : memref<16x128xf32, #tpu.memory_space<vmem>>, vector<16x128xf32>
    %c0_i32_14 = arith.constant 0 : i32
    %c16_i32 = arith.constant 16 : i32
    %15 = arith.muli %c0_i32_14, %c16_i32 : i32
    %16 = tpu.assume_multiple %15, 16 : i32
    %c0_15 = arith.constant 0 : index
    %c0_16 = arith.constant 0 : index
    %c0_17 = arith.constant 0 : index
    %17 = vector.load %arg4[%c0_15, %c0_16, %c0_17] : memref<1x128x512xbf16, #tpu.memory_space<vmem>>, vector<1x128x512xbf16>
    %18 = vector.shape_cast %17 : vector<1x128x512xbf16> to vector<128x512xbf16>
    %cst_18 = arith.constant dense<0.000000e+00> : vector<16x512xf32>
    %19 = tpu.matmul %13, %18, %cst_18 {dimension_numbers = #tpu.dot_dimension_numbers<[1], [0], [0], [1], [0, 0, 1, 1], [], []>} : vector<16x128xbf16>, vector<128x512xbf16>, vector<16x512xf32> -> vector<16x512xf32>
    %20 = arith.index_cast %16 : i32 to index
    %c0_19 = arith.constant 0 : index
    %21 = vector.load %arg8[%20, %c0_19] : memref<64x512xbf16, #tpu.memory_space<vmem>>, vector<16x512xbf16>
    %22 = arith.extf %21 : vector<16x512xbf16> to vector<16x512xf32>
    %23 = arith.addf %19, %22 : vector<16x512xf32>
    %24 = math.tanh %23 : vector<16x512xf32>
    %25 = vector.extract_strided_slice %24 {offsets = [0, 0], sizes = [16, 128], strides = [1, 1]} : vector<16x512xf32> to vector<16x128xf32>
    %cst_20 = arith.constant 5.000000e-01 : f32
    %26 = vector.broadcast %cst_20 : f32 to vector<16x128xf32>
    %27 = arith.mulf %25, %26 : vector<16x128xf32>
    %cst_21 = arith.constant 5.000000e-01 : f32
    %28 = vector.broadcast %cst_21 : f32 to vector<16x128xf32>
    %29 = arith.addf %27, %28 : vector<16x128xf32>
    %30 = vector.extract_strided_slice %24 {offsets = [0, 128], sizes = [16, 128], strides = [1, 1]} : vector<16x512xf32> to vector<16x128xf32>
    %cst_22 = arith.constant 5.000000e-01 : f32
    %31 = vector.broadcast %cst_22 : f32 to vector<16x128xf32>
    %32 = arith.mulf %30, %31 : vector<16x128xf32>
    %cst_23 = arith.constant 5.000000e-01 : f32
    %33 = vector.broadcast %cst_23 : f32 to vector<16x128xf32>
    %34 = arith.addf %32, %33 : vector<16x128xf32>
    %35 = vector.extract_strided_slice %24 {offsets = [0, 256], sizes = [16, 128], strides = [1, 1]} : vector<16x512xf32> to vector<16x128xf32>
    %36 = vector.extract_strided_slice %24 {offsets = [0, 384], sizes = [16, 128], strides = [1, 1]} : vector<16x512xf32> to vector<16x128xf32>
    %cst_24 = arith.constant 5.000000e-01 : f32
    %37 = vector.broadcast %cst_24 : f32 to vector<16x128xf32>
    %38 = arith.mulf %36, %37 : vector<16x128xf32>
    %cst_25 = arith.constant 5.000000e-01 : f32
    %39 = vector.broadcast %cst_25 : f32 to vector<16x128xf32>
    %40 = arith.addf %38, %39 : vector<16x128xf32>
    %41 = arith.mulf %34, %14 : vector<16x128xf32>
    %42 = arith.mulf %29, %35 : vector<16x128xf32>
    %43 = arith.addf %41, %42 : vector<16x128xf32>
    %44 = math.tanh %43 : vector<16x128xf32>
    %45 = arith.mulf %40, %44 : vector<16x128xf32>
    %46 = arith.truncf %45 : vector<16x128xf32> to vector<16x128xbf16>
    %47 = arith.index_cast %16 : i32 to index
    %c0_26 = arith.constant 0 : index
    %48 = vector.load %arg9[%47, %c0_26] : memref<64x128xbf16, #tpu.memory_space<vmem>>, vector<16x128xbf16>
    tpu.vector_store %arg9[%47, %c0_26], %46 {strides = array<i32>} : memref<64x128xbf16, #tpu.memory_space<vmem>>, vector<16x128xbf16>,
    %c1_i32 = arith.constant 1 : i32
    %c16_i32_27 = arith.constant 16 : i32
    %49 = arith.muli %c1_i32, %c16_i32_27 : i32
    %50 = tpu.assume_multiple %49, 16 : i32
    %c0_28 = arith.constant 0 : index
    %c0_29 = arith.constant 0 : index
    %c0_30 = arith.constant 0 : index
    %51 = vector.load %arg4[%c0_28, %c0_29, %c0_30] : memref<1x128x512xbf16, #tpu.memory_space<vmem>>, vector<1x128x512xbf16>
    %52 = vector.shape_cast %51 : vector<1x128x512xbf16> to vector<128x512xbf16>
    %cst_31 = arith.constant dense<0.000000e+00> : vector<16x512xf32>
    %53 = tpu.matmul %46, %52, %cst_31 {dimension_numbers = #tpu.dot_dimension_numbers<[1], [0], [0], [1], [0, 0, 1, 1], [], []>} : vector<16x128xbf16>, vector<128x512xbf16>, vector<16x512xf32> -> vector<16x512xf32>
    %54 = arith.index_cast %50 : i32 to index
    %c0_32 = arith.constant 0 : index
    %55 = vector.load %arg8[%54, %c0_32] : memref<64x512xbf16, #tpu.memory_space<vmem>>, vector<16x512xbf16>
    %56 = arith.extf %55 : vector<16x512xbf16> to vector<16x512xf32>
    %57 = arith.addf %53, %56 : vector<16x512xf32>
    %58 = math.tanh %57 : vector<16x512xf32>
    %59 = vector.extract_strided_slice %58 {offsets = [0, 0], sizes = [16, 128], strides = [1, 1]} : vector<16x512xf32> to vector<16x128xf32>
    %cst_33 = arith.constant 5.000000e-01 : f32
    %60 = vector.broadcast %cst_33 : f32 to vector<16x128xf32>
    %61 = arith.mulf %59, %60 : vector<16x128xf32>
    %cst_34 = arith.constant 5.000000e-01 : f32
    %62 = vector.broadcast %cst_34 : f32 to vector<16x128xf32>
    %63 = arith.addf %61, %62 : vector<16x128xf32>
    %64 = vector.extract_strided_slice %58 {offsets = [0, 128], sizes = [16, 128], strides = [1, 1]} : vector<16x512xf32> to vector<16x128xf32>
    %cst_35 = arith.constant 5.000000e-01 : f32
    %65 = vector.broadcast %cst_35 : f32 to vector<16x128xf32>
    %66 = arith.mulf %64, %65 : vector<16x128xf32>
    %cst_36 = arith.constant 5.000000e-01 : f32
    %67 = vector.broadcast %cst_36 : f32 to vector<16x128xf32>
    %68 = arith.addf %66, %67 : vector<16x128xf32>
    %69 = vector.extract_strided_slice %58 {offsets = [0, 256], sizes = [16, 128], strides = [1, 1]} : vector<16x512xf32> to vector<16x128xf32>
    %70 = vector.extract_strided_slice %58 {offsets = [0, 384], sizes = [16, 128], strides = [1, 1]} : vector<16x512xf32> to vector<16x128xf32>
    %cst_37 = arith.constant 5.000000e-01 : f32
    %71 = vector.broadcast %cst_37 : f32 to vector<16x128xf32>
    %72 = arith.mulf %70, %71 : vector<16x128xf32>
    %cst_38 = arith.constant 5.000000e-01 : f32
    %73 = vector.broadcast %cst_38 : f32 to vector<16x128xf32>
    %74 = arith.addf %72, %73 : vector<16x128xf32>
    %75 = arith.mulf %68, %43 : vector<16x128xf32>
    %76 = arith.mulf %63, %69 : vector<16x128xf32>
    %77 = arith.addf %75, %76 : vector<16x128xf32>
    %78 = math.tanh %77 : vector<16x128xf32>
    %79 = arith.mulf %74, %78 : vector<16x128xf32>
    %80 = arith.truncf %79 : vector<16x128xf32> to vector<16x128xbf16>
    %81 = arith.index_cast %50 : i32 to index
    %c0_39 = arith.constant 0 : index
    %82 = vector.load %arg9[%81, %c0_39] : memref<64x128xbf16, #tpu.memory_space<vmem>>, vector<16x128xbf16>
    tpu.vector_store %arg9[%81, %c0_39], %80 {strides = array<i32>} : memref<64x128xbf16, #tpu.memory_space<vmem>>, vector<16x128xbf16>,
    %c2_i32 = arith.constant 2 : i32
    %c16_i32_40 = arith.constant 16 : i32
    %83 = arith.muli %c2_i32, %c16_i32_40 : i32
    %84 = tpu.assume_multiple %83, 16 : i32
    %c0_41 = arith.constant 0 : index
    %c0_42 = arith.constant 0 : index
    %c0_43 = arith.constant 0 : index
    %85 = vector.load %arg4[%c0_41, %c0_42, %c0_43] : memref<1x128x512xbf16, #tpu.memory_space<vmem>>, vector<1x128x512xbf16>
    %86 = vector.shape_cast %85 : vector<1x128x512xbf16> to vector<128x512xbf16>
    %cst_44 = arith.constant dense<0.000000e+00> : vector<16x512xf32>
    %87 = tpu.matmul %80, %86, %cst_44 {dimension_numbers = #tpu.dot_dimension_numbers<[1], [0], [0], [1], [0, 0, 1, 1], [], []>} : vector<16x128xbf16>, vector<128x512xbf16>, vector<16x512xf32> -> vector<16x512xf32>
    %88 = arith.index_cast %84 : i32 to index
    %c0_45 = arith.constant 0 : index
    %89 = vector.load %arg8[%88, %c0_45] : memref<64x512xbf16, #tpu.memory_space<vmem>>, vector<16x512xbf16>
    %90 = arith.extf %89 : vector<16x512xbf16> to vector<16x512xf32>
    %91 = arith.addf %87, %90 : vector<16x512xf32>
    %92 = math.tanh %91 : vector<16x512xf32>
    %93 = vector.extract_strided_slice %92 {offsets = [0, 0], sizes = [16, 128], strides = [1, 1]} : vector<16x512xf32> to vector<16x128xf32>
    %cst_46 = arith.constant 5.000000e-01 : f32
    %94 = vector.broadcast %cst_46 : f32 to vector<16x128xf32>
    %95 = arith.mulf %93, %94 : vector<16x128xf32>
    %cst_47 = arith.constant 5.000000e-01 : f32
    %96 = vector.broadcast %cst_47 : f32 to vector<16x128xf32>
    %97 = arith.addf %95, %96 : vector<16x128xf32>
    %98 = vector.extract_strided_slice %92 {offsets = [0, 128], sizes = [16, 128], strides = [1, 1]} : vector<16x512xf32> to vector<16x128xf32>
    %cst_48 = arith.constant 5.000000e-01 : f32
    %99 = vector.broadcast %cst_48 : f32 to vector<16x128xf32>
    %100 = arith.mulf %98, %99 : vector<16x128xf32>
    %cst_49 = arith.constant 5.000000e-01 : f32
    %101 = vector.broadcast %cst_49 : f32 to vector<16x128xf32>
    %102 = arith.addf %100, %101 : vector<16x128xf32>
    %103 = vector.extract_strided_slice %92 {offsets = [0, 256], sizes = [16, 128], strides = [1, 1]} : vector<16x512xf32> to vector<16x128xf32>
    %104 = vector.extract_strided_slice %92 {offsets = [0, 384], sizes = [16, 128], strides = [1, 1]} : vector<16x512xf32> to vector<16x128xf32>
    %cst_50 = arith.constant 5.000000e-01 : f32
    %105 = vector.broadcast %cst_50 : f32 to vector<16x128xf32>
    %106 = arith.mulf %104, %105 : vector<16x128xf32>
    %cst_51 = arith.constant 5.000000e-01 : f32
    %107 = vector.broadcast %cst_51 : f32 to vector<16x128xf32>
    %108 = arith.addf %106, %107 : vector<16x128xf32>
    %109 = arith.mulf %102, %77 : vector<16x128xf32>
    %110 = arith.mulf %97, %103 : vector<16x128xf32>
    %111 = arith.addf %109, %110 : vector<16x128xf32>
    %112 = math.tanh %111 : vector<16x128xf32>
    %113 = arith.mulf %108, %112 : vector<16x128xf32>
    %114 = arith.truncf %113 : vector<16x128xf32> to vector<16x128xbf16>
    %115 = arith.index_cast %84 : i32 to index
    %c0_52 = arith.constant 0 : index
    %116 = vector.load %arg9[%115, %c0_52] : memref<64x128xbf16, #tpu.memory_space<vmem>>, vector<16x128xbf16>
    tpu.vector_store %arg9[%115, %c0_52], %114 {strides = array<i32>} : memref<64x128xbf16, #tpu.memory_space<vmem>>, vector<16x128xbf16>,
    %c3_i32 = arith.constant 3 : i32
    %c16_i32_53 = arith.constant 16 : i32
    %117 = arith.muli %c3_i32, %c16_i32_53 : i32
    %118 = tpu.assume_multiple %117, 16 : i32
    %c0_54 = arith.constant 0 : index
    %c0_55 = arith.constant 0 : index
    %c0_56 = arith.constant 0 : index
    %119 = vector.load %arg4[%c0_54, %c0_55, %c0_56] : memref<1x128x512xbf16, #tpu.memory_space<vmem>>, vector<1x128x512xbf16>
    %120 = vector.shape_cast %119 : vector<1x128x512xbf16> to vector<128x512xbf16>
    %cst_57 = arith.constant dense<0.000000e+00> : vector<16x512xf32>
    %121 = tpu.matmul %114, %120, %cst_57 {dimension_numbers = #tpu.dot_dimension_numbers<[1], [0], [0], [1], [0, 0, 1, 1], [], []>} : vector<16x128xbf16>, vector<128x512xbf16>, vector<16x512xf32> -> vector<16x512xf32>
    %122 = arith.index_cast %118 : i32 to index
    %c0_58 = arith.constant 0 : index
    %123 = vector.load %arg8[%122, %c0_58] : memref<64x512xbf16, #tpu.memory_space<vmem>>, vector<16x512xbf16>
    %124 = arith.extf %123 : vector<16x512xbf16> to vector<16x512xf32>
    %125 = arith.addf %121, %124 : vector<16x512xf32>
    %126 = math.tanh %125 : vector<16x512xf32>
    %127 = vector.extract_strided_slice %126 {offsets = [0, 0], sizes = [16, 128], strides = [1, 1]} : vector<16x512xf32> to vector<16x128xf32>
    %cst_59 = arith.constant 5.000000e-01 : f32
    %128 = vector.broadcast %cst_59 : f32 to vector<16x128xf32>
    %129 = arith.mulf %127, %128 : vector<16x128xf32>
    %cst_60 = arith.constant 5.000000e-01 : f32
    %130 = vector.broadcast %cst_60 : f32 to vector<16x128xf32>
    %131 = arith.addf %129, %130 : vector<16x128xf32>
    %132 = vector.extract_strided_slice %126 {offsets = [0, 128], sizes = [16, 128], strides = [1, 1]} : vector<16x512xf32> to vector<16x128xf32>
    %cst_61 = arith.constant 5.000000e-01 : f32
    %133 = vector.broadcast %cst_61 : f32 to vector<16x128xf32>
    %134 = arith.mulf %132, %133 : vector<16x128xf32>
    %cst_62 = arith.constant 5.000000e-01 : f32
    %135 = vector.broadcast %cst_62 : f32 to vector<16x128xf32>
    %136 = arith.addf %134, %135 : vector<16x128xf32>
    %137 = vector.extract_strided_slice %126 {offsets = [0, 256], sizes = [16, 128], strides = [1, 1]} : vector<16x512xf32> to vector<16x128xf32>
    %138 = vector.extract_strided_slice %126 {offsets = [0, 384], sizes = [16, 128], strides = [1, 1]} : vector<16x512xf32> to vector<16x128xf32>
    %cst_63 = arith.constant 5.000000e-01 : f32
    %139 = vector.broadcast %cst_63 : f32 to vector<16x128xf32>
    %140 = arith.mulf %138, %139 : vector<16x128xf32>
    %cst_64 = arith.constant 5.000000e-01 : f32
    %141 = vector.broadcast %cst_64 : f32 to vector<16x128xf32>
    %142 = arith.addf %140, %141 : vector<16x128xf32>
    %143 = arith.mulf %136, %111 : vector<16x128xf32>
    %144 = arith.mulf %131, %137 : vector<16x128xf32>
    %145 = arith.addf %143, %144 : vector<16x128xf32>
    %146 = math.tanh %145 : vector<16x128xf32>
    %147 = arith.mulf %142, %146 : vector<16x128xf32>
    %148 = arith.truncf %147 : vector<16x128xf32> to vector<16x128xbf16>
    %149 = arith.index_cast %118 : i32 to index
    %c0_65 = arith.constant 0 : index
    %150 = vector.load %arg9[%149, %c0_65] : memref<64x128xbf16, #tpu.memory_space<vmem>>, vector<16x128xbf16>
    tpu.vector_store %arg9[%149, %c0_65], %148 {strides = array<i32>} : memref<64x128xbf16, #tpu.memory_space<vmem>>, vector<16x128xbf16>,
    %c4_i32 = arith.constant 4 : i32
    %c0_66 = arith.constant 0 : index
    %c0_67 = arith.constant 0 : index
    %151 = vector.load %arg10[%c0_66, %c0_67] : memref<16x128xbf16, #tpu.memory_space<vmem>>, vector<16x128xbf16>
    tpu.vector_store %arg10[%c0_66, %c0_67], %148 {strides = array<i32>} : memref<16x128xbf16, #tpu.memory_space<vmem>>, vector<16x128xbf16>,
    %c0_68 = arith.constant 0 : index
    %c0_69 = arith.constant 0 : index
    %152 = vector.load %arg11[%c0_68, %c0_69] : memref<16x128xf32, #tpu.memory_space<vmem>>, vector<16x128xf32>
    tpu.vector_store %arg11[%c0_68, %c0_69], %145 {strides = array<i32>} : memref<16x128xf32, #tpu.memory_space<vmem>>, vector<16x128xf32>,
    %c0_70 = arith.constant 0 : index
    %c0_71 = arith.constant 0 : index
    %153 = vector.load %arg9[%c0_70, %c0_71] : memref<64x128xbf16, #tpu.memory_space<vmem>>, vector<64x128xbf16>
    %c0_72 = arith.constant 0 : index
    %c0_73 = arith.constant 0 : index
    %c0_74 = arith.constant 0 : index
    %154 = vector.load %arg6[%c0_72, %c0_73, %c0_74] : memref<1x128x128xbf16, #tpu.memory_space<vmem>>, vector<1x128x128xbf16>
    %155 = vector.shape_cast %154 : vector<1x128x128xbf16> to vector<128x128xbf16>
    %cst_75 = arith.constant dense<0.000000e+00> : vector<64x128xf32>
    %156 = tpu.matmul %153, %155, %cst_75 {dimension_numbers = #tpu.dot_dimension_numbers<[1], [0], [0], [1], [0, 0, 1, 1], [], []>} : vector<64x128xbf16>, vector<128x128xbf16>, vector<64x128xf32> -> vector<64x128xf32>
    %157 = arith.truncf %156 : vector<64x128xf32> to vector<64x128xbf16>
    %c0_76 = arith.constant 0 : index
    %c0_77 = arith.constant 0 : index
    %c0_78 = arith.constant 0 : index
    %158 = vector.load %arg7[%c0_76, %c0_77, %c0_78] : memref<1x64x128xbf16, #tpu.memory_space<vmem>>, vector<1x64x128xbf16>
    %159 = vector.shape_cast %158 : vector<1x64x128xbf16> to vector<64x128xbf16>
    %160 = vector.shape_cast %157 : vector<64x128xbf16> to vector<1x64x128xbf16>
    tpu.vector_store %arg7[%c0_76, %c0_77, %c0_78], %160 {strides = array<i32>} : memref<1x64x128xbf16, #tpu.memory_space<vmem>>, vector<1x64x128xbf16>,
    return
  }
  func.func @transform_0(%arg0: i32, %arg1: i32) -> (i32, i32) {
    %c0_i32 = arith.constant 0 : i32
    %c0_i32_0 = arith.constant 0 : i32
    return %arg1, %c0_i32 : i32, i32
  }
  func.func @transform_1(%arg0: i32, %arg1: i32) -> (i32, i32, i32) {
    %c0_i32 = arith.constant 0 : i32
    %c0_i32_0 = arith.constant 0 : i32
    %c0_i32_1 = arith.constant 0 : i32
    return %arg0, %c0_i32, %c0_i32_0 : i32, i32, i32
  }
  func.func @transform_2(%arg0: i32, %arg1: i32) -> (i32, i32, i32) {
    %c0_i32 = arith.constant 0 : i32
    %c0_i32_0 = arith.constant 0 : i32
    %c0_i32_1 = arith.constant 0 : i32
    return %arg0, %c0_i32, %c0_i32_0 : i32, i32, i32
  }
  func.func @transform_3(%arg0: i32, %arg1: i32) -> (i32, i32, i32) {
    %c0_i32 = arith.constant 0 : i32
    %c0_i32_0 = arith.constant 0 : i32
    %c0_i32_1 = arith.constant 0 : i32
    return %arg0, %c0_i32, %c0_i32_0 : i32, i32, i32
  }
  func.func @transform_4(%arg0: i32, %arg1: i32) -> (i32, i32, i32) {
    %c0_i32 = arith.constant 0 : i32
    %c0_i32_0 = arith.constant 0 : i32
    %c0_i32_1 = arith.constant 0 : i32
    return %arg0, %c0_i32, %c0_i32_0 : i32, i32, i32
  }
  func.func @transform_5(%arg0: i32, %arg1: i32) -> (i32, i32, i32) {
    %c0_i32 = arith.constant 0 : i32
    %c0_i32_0 = arith.constant 0 : i32
    return %arg0, %arg1, %c0_i32 : i32, i32, i32
  }
}

</mosaic_0001>

<bundles_post_ra>
// kernel: tpu_custom_call.1
= control target key start
LH: loop header
LB: loop body
LE: loop exit
PB: predicated region body
PF: predicated region fallthrough
CT: control target
= control target key end

     0   :  { %s4765_s0 = inlined_call_operand.hbm [shape: bf16[128,128], index: 0, kind: input, shape index: {}]   ;;  %s4766_s1 = inlined_call_operand.hbm [shape: bf16[2,128,512], index: 1, kind: input, shape index: {}]   ;;  %s4767_s2 = inlined_call_operand.hbm [shape: bf16[2,128,512], index: 2, kind: input, shape index: {}]   ;;  %s4768_s3 = inlined_call_operand.hbm [shape: f32[2,1,512], index: 3, kind: input, shape index: {}]   ;;  %s4769_s4 = inlined_call_operand.hbm [shape: bf16[2,128,128], index: 4, kind: input, shape index: {}]   ;;  %s4770_s5 = inlined_call_operand.hbm [shape: bf16[2,128,128], index: 5, kind: output, shape index: {}]  }
   0x1   :  { %4785 = sst [smem:[#allocation35_spill]] %s4765_s0 }
   0x2   :  { %4786 = sst [smem:[#allocation36_spill]] %s4766_s1 }
   0x3   :  { %4787 = sst [smem:[#allocation37_spill]] %s4767_s2 }
   0x4   :  { %4788 = sst [smem:[#allocation38_spill]] %s4768_s3 }
   0x5   :  { %4789 = sst [smem:[#allocation39_spill]] %s4769_s4 }
   0x6   :  { %4790 = sst [smem:[#allocation40_spill]] %s4770_s5 }
   0x7   :  { %10 = vsyncpa [#allocation7], 0 }
   0x8   :  { %12 = vsyncpa [#allocation7 + $0x1], 0 }
   0x9   :  { %13 = vsyncpa [#allocation10], 0 }
   0xa   :  { %15 = vsyncpa [#allocation10 + $0x1], 0 }
   0xb   :  { %16 = vsyncpa [#allocation13], 0 }
   0xc   :  { %18 = vsyncpa [#allocation13 + $0x1], 0 }
   0xd   :  { %19 = vsyncpa [#allocation8], 0 }
   0xe   :  { %21 = vsyncpa [#allocation8 + $0x1], 0  ;;  %s3924_s18 = smov 0   ;;  %s3926_s19 = smov 0  }
   0xf   :  { %s3928_s20 = smov 0   ;;  %s3930_s21 = smov 0  }
  0x10   :  { %s3932_s22 = smov 0   ;;  %s3934_s23 = smov 0  }
  0x11   :  { %s3936_s24 = smov 0   ;;  %s3938_s25 = smov 0  }
  0x12   :  { %s3940_s26 = smov 0   ;;  %s3942_s27 = smov 0  }
  0x13   :  { %s3944_s28 = smov 0   ;;  %s3946_s29 = smov 0  }
  0x14   :  { %s3948_s30 = smov 0   ;;  %s3950_s6 = smov 0  }
  0x15 LB: > { %4791 = sst [smem:[#allocation20_spill]] %s3832_s18  ;;  %p54_p0 = scmp.eq.s32.totalorder %s3884_s6, 0  ;;  %s3884_s6 = sphi %s3950_s6, %s27_s6   ;;  %s3880_s30 = sphi %s3948_s30, %s4848_s30   ;;  %s3876_s29 = sphi %s3946_s29, %s4841_s29   ;;  %s3872_s28 = sphi %s3944_s28, %s4847_s28   ;;  %s3868_s27 = sphi %s3942_s27, %s4840_s27   ;;  %s3864_s26 = sphi %s3940_s26, %s4839_s26   ;;  %s3860_s25 = sphi %s3938_s25, %s4838_s25   ;;  %s3856_s24 = sphi %s3936_s24, %s4837_s24   ;;  %s3852_s23 = sphi %s3934_s23, %s4836_s23   ;;  %s3848_s22 = sphi %s3932_s22, %s4846_s22   ;;  %s3844_s21 = sphi %s3930_s21, %s4845_s21   ;;  %s3840_s20 = sphi %s3928_s20, %s4834_s20   ;;  %s3836_s19 = sphi %s3926_s19, %s4844_s19   ;;  %s3832_s18 = sphi %s3924_s18, %s4843_s18  }
  0x16   : > { %4792 = sst [smem:[#allocation21_spill]] %s3840_s20  ;;  %p79_p1 = scmp.ne.s32.totalorder %s3852_s23, %s3848_s22 }
  0x17   : > { %4793 = sst [smem:[#allocation22_spill]] %s3852_s23  ;;  %p85_p2 = scmp.ne.s32.totalorder %s3848_s22, %s3844_s21 }
  0x18   : > { %4794 = sst [smem:[#allocation23_spill]] %s3860_s25  ;;  %p4777_p3 = scmp.lt.s32.totalorder %s3884_s6, 4 }
  0x19   : > { %4795 = sst [smem:[#allocation24_spill]] %s3864_s26  ;;  %p81_p4 = por %p79_p1, %p54_p0 }
  0x1a   : > { %4796 = sst [smem:[#allocation25_spill]] %s3868_s27  ;;  %s4005_s9 = sand.u32 1, %s3852_s23  }
  0x1b   : > { %4797 = sst [smem:[#allocation26_spill]] %s3872_s28  ;;  %s2376_s10 = sshll.u32 %s4005_s9, 8 }
  0x1c   : > { %4798 = sst [smem:[#allocation27_spill]] %s3876_s29  ;;  %s3110_s11 = sshll.u32 %s3880_s30, 8 }
  0x1d   : > { %s4799_s1 = sld [smem:[#allocation36_spill]]  ;;  %s241_s16 = scalar_lea.vmem [#allocation9], %s2376_s10 }
  0x1e   : > { %s249_s17 = sshll.u32 %s241_s16, 4  ;;  %p4014_p5 = pnand %p4777_p3, %p81_p4  ;;  %s250_s17 = int_to_ptr.vmem [resolvable:$true] %s249_s17 }
  0x1f   : > { %s4801_s2 = sld [smem:[#allocation37_spill]]  ;;  %s4802_s13 = sand.u32 1, %s3884_s6  }
  0x20   : > { %s4773_s16 = smov 16   ;;  %s263_s27 = scalar_lea.vmem [#allocation11], %s2376_s10 }
  0x21   : > { %s271_s4 = sshll.u32 %s263_s27, 4  ;;  %p2387_p6 = scmp.ge.s32.totalorder %s3884_s6, 1  ;;  %s4033_s4 = int_to_ptr.vmem [resolvable:$true] %s271_s4 }
  0x22   : > { %p320_p7 = scmp.lt.s32.totalorder %s3884_s6, 5  ;;  %s2382_s5 = sshll.u32 %s4005_s9, 2 }
  0x23   : > { %s246_s14 = scalar_lea.hbm %s4799_s1, %s3110_s11  ;;  %s4772_s1 = smov 256  }
  0x24   : > { %s247_s15 = sshll.u32 %s246_s14, 4  ;;  %s4023_s14 = scalar_lea.sflag [#allocation10], %s4802_s13  ;;  %s248_s15 = int_to_ptr.hbm [resolvable:$true] %s247_s15 }
  0x25   : > { %s268_s12 = scalar_lea.hbm %s4801_s2, %s3110_s11  ;;  %p4038_p8 = pnand %p2387_p6, %p320_p7 }
  0x26   : > { %3364 = dma.hbm_to_vmem [thread:$0]  (!%p4014_p5), %s248_s15, 4096, %s250_s17, %s4023_s14, %s4772_s1, %s4772_s1, %s4773_s16  }
  0x27   : > { %s269_s28 = sshll.u32 %s268_s12, 4  ;;  %s2383_s10 = sshll.u32 %s3880_s30, 2  ;;  %s4031_s28 = int_to_ptr.hbm [resolvable:$true] %s269_s28 }
  0x28   : > { %s4803_s8 = scalar_select %p4038_p8, 1, 0 }
  0x29   : > { %s285_s27 = scalar_lea.vmem [#allocation12], %s2382_s5  ;;  %s4805_s3 = sld [smem:[#allocation38_spill]] }
  0x2a   : > { %4804 = sst [smem:[#allocation28_spill]] %s4803_s8  ;;  %s293_s11 = sshll.u32 %s285_s27, 4  ;;  %s294_s11 = int_to_ptr.vmem [resolvable:$true] %s293_s11 }
  0x2b   : > { %s4806_s1 = sand.u32 1, %s3884_s6   ;;  %s4054_s2 = sadd.s32 4294967295, %s3884_s6  }
  0x2c   : > { %s4048_s16 = scalar_lea.sflag [#allocation13], %s4806_s1  ;;  %s2370_s5 = sadd.s32 4294967294, %s3884_s6  }
  0x2d   : > { %s36_s27 = sadd.s32 1, %s3876_s29  ;;  %s39_s15 = sadd.s32 1, %s3880_s30 }
  0x2e   : > { %p37_p9 = scmp.ge.s32.totalorder %s36_s27, 2  ;;  %p53_p10 = scmp.ne.s32.totalorder %s3864_s26, %s3860_s25 }
  0x2f   : > { %s289_s12 = scalar_lea.hbm %s4805_s3, %s2383_s10  ;;  %s46_s10 = sadd.s32 1, %s3864_s26 }
  0x30   : > { %s291_s13 = sshll.u32 %s289_s12, 4  ;;  %p59_p11 = scmp.ne.s32.totalorder %s3860_s25, %s3856_s24  ;;  %s292_s13 = int_to_ptr.hbm [resolvable:$true] %s291_s13 }
  0x31   : > { %3370 = dma.hbm_to_vmem [thread:$0]  (!%p4014_p5), %s292_s13, 64, %s294_s11, %s4048_s16  }
  0x32   : > { %s4850_s27 = smov (%p37_p9, %s36_s27), 0  ;;  %s4852_s15 = smov (!%p37_p9, %s39_s15), %s3880_s30 }
  0x33   : > { %4807 = sst [smem:[#allocation29_spill]] %s4850_s27  ;;  %s43_s1 = ssub.s32 %s3876_s29, %s4850_s27 }
  0x34   : > { %p4071_p12 = por %p54_p0, %p53_p10  ;;  %p41_p13 = scmp.ge.s32.totalorder %s4852_s15, 2 }
  0x35   : > { %p44_p1 = scmp.eq.s32.totalorder %s43_s1, 0  ;;  %p60_p4 = scmp.eq.s32.totalorder %s4054_s2, 0 }
  0x36   : > { %s178_s24 = sadd.s32 1, %s3840_s20  ;;  %s4854_s15 = smov (%p41_p13, %s4852_s15), 0 }
  0x37   : > { %4809 = sst [smem:[#allocation30_spill]] %s4854_s15  ;;  %p4082_p6 = por %p60_p4, %p59_p11 }
  0x38   : > { %s4080_s17 = scalar_select %p44_p1, %s3864_s26, %s46_s10  }
  0x39   : > { %s69_s13 = ssub.s32 %s3880_s30, %s4854_s15  ;;  %p4091_p7 = por %p85_p2, %p60_p4 }
  0x3a   : > { %4810 = sst [smem:[#allocation31_spill]] %s4080_s17  ;;  %p70_p0 = scmp.eq.s32.totalorder %s69_s13, 0 }
  0x3b   : > { %s175_s27 = sor.u32 %s69_s13, %s43_s1  ;;  %p188_p9 = scmp.ne.s32.totalorder %s3840_s20, %s3836_s19 }
  0x3c   : > { %s4813_s25 = sadd.s32 1, %s3852_s23  ;;  %p176_p10 = scmp.eq.s32.totalorder %s175_s27, 0 }
  0x3d   : > { %s4100_s8 = scalar_select %p70_p0, %s3852_s23, %s4813_s25  }
  0x3e   : > { %p189_p13 = scmp.eq.s32.totalorder %s4054_s2, 3  ;;  %p194_p11 = scmp.ne.s32.totalorder %s3836_s19, %s3832_s18 }
  0x3f   : > { %4814 = sst [smem:[#allocation32_spill]] %s4100_s8  ;;  %p195_p1 = scmp.eq.s32.totalorder %s2370_s5, 3 }
  0x40   : > { %s4106_s10 = scalar_select %p176_p10, %s3840_s20, %s178_s24  }
  0x41   : > { %p4108_p3 = por %p189_p13, %p188_p9  ;;  %p4112_p2 = por %p195_p1, %p194_p11 }
  0x42   : > { %4815 = sst [smem:[#allocation33_spill]] %s4106_s10  ;;  %s215_s25 = sand.u32 1, %s3864_s26  }
  0x43   : > { %s4817_s15 = scalar_select %p4112_p2, 1, 0 }
  0x44   : > { %s3109_s27 = sshll.u32 %s3876_s29, 5  ;;  %s2373_s1 = sshll.u32 %s215_s25, 5 }
  0x45   : > { %4818 = sst [smem:[#allocation34_spill]] %s4817_s15  ;;  %s219_s8 = scalar_lea.vmem [#allocation6], %s2373_s1 }
  0x46   : > { %s4819_s0 = sld [smem:[#allocation35_spill]]  ;;  %s227_s23 = sshll.u32 %s219_s8, 4  ;;  %s228_s23 = int_to_ptr.vmem [resolvable:$true] %s227_s23 }
  0x47   : > { %p4820_p4 = scmp.lt.s32.totalorder %s3884_s6, 4  ;;  %s2384_s10 = sshll.u32 %s4005_s9, 6 }
  0x48   : > { %s216_s20 = scalar_lea.sflag [#allocation7], %s215_s25  ;;  %s3888_s26 = smov 64  }
  0x49   : > { %p3359_p0 = pnand %p4820_p4, %p4071_p12  ;;  %s3889_s15 = smov 4  }
  0x4a   : > { %s4821_s29 = smov 16   ;;  %s4822_s18 = smov 256  }
  0x4b   : > { %3367 = dma.hbm_to_vmem [thread:$0]  (!%p4014_p5), %s4031_s28, 4096, %s4033_s4, %s4023_s14, %s4822_s18, %s4822_s18, %s4821_s29  }
  0x4c   : > { %s224_s24 = scalar_lea.hbm %s4819_s0, %s3109_s27  ;;  %s3112_s27 = sshll.u32 %s3880_s30, 6 }
  0x4d   : > { %s225_s17 = sshll.u32 %s224_s24, 4  ;;  %s304_s1 = scalar_lea.vmem [#allocation14], %s2384_s10  ;;  %s226_s17 = int_to_ptr.hbm [resolvable:$true] %s225_s17 }
  0x4e   : > { %3361 = dma.hbm_to_vmem [thread:$0]  (!%p3359_p0), %s226_s17, 512, %s228_s23, %s216_s20, %s3888_s26, %s3888_s26, %s3889_s15  }
  0x4f   : > { %s312_s8 = sshll.u32 %s304_s1, 4  ;;  %s4823_s24 = sld [smem:[#allocation39_spill]]  ;;  %s313_s8 = int_to_ptr.vmem [resolvable:$true] %s312_s8 }
  0x50   : > { %s4825_s20 = sld [smem:[#allocation23_spill]] (!%p4038_p8) }
  0x53   : > { %324 = sbr.rel (%p4038_p8) target bundleno = 1067 (0x42b), region = 40 }
  0x55   : > { %s309_s0 = scalar_lea.hbm %s4823_s24, %s3112_s27 }
  0x56   : > { %s310_s11 = sshll.u32 %s309_s0, 4  ;;  %s326_s23 = sand.u32 (!%p4038_p8), 1, %s4825_s20   ;;  %s311_s11 = int_to_ptr.hbm [resolvable:$true] %s310_s11 }
  0x57   : > { %3373 = dma.hbm_to_vmem [thread:$0]  (!%p4014_p5), %s311_s11, 1024, %s313_s8, %s4048_s16, %s3888_s26, %s3888_s26, %s3889_s15  }
  0x58   : > { %s2388_s17 = sshll.u32 %s326_s23, 5  ;;  %s327_s4 = scalar_lea.sflag [#allocation7], %s326_s23 }
  0x59   : > { %s4144_s18 = scalar_lea.vmem [#allocation6], %s2388_s17 }
  0x5a   : > { %3815 = dma.done.wait (%p4082_p6), %s327_s4, 512  }
  0x5b   : > { %3817 = vsyncadd (%p4082_p6), %s327_s4, 4294966784  ;;  %s336_s0 = sand.u32 1, %s4054_s2   ;;  %s338_s26 = sand.u32 1, %s3848_s22  }
  0x5c   : > { %s2389_s28 = sshll.u32 %s338_s26, 8  ;;  %s337_s29 = scalar_lea.sflag [#allocation10], %s336_s0 }
  0x5d   : > { %s4152_s7 = scalar_lea.vmem [#allocation9], %s2389_s28 }
  0x5e   : > { %3819 = dma.done.wait (%p4091_p7), %s337_s29, 8192  }
  0x5f   : > { %3821 = vsyncadd (%p4091_p7), %s337_s29, 4294959104  ;;  %s2391_s14 = sshll.u32 %s338_s26, 2  ;;  %s4158_s16 = scalar_lea.vmem [#allocation11], %s2389_s28 }
  0x60   : > { %s357_s15 = scalar_lea.sflag [#allocation13], %s336_s0  ;;  %s4160_s12 = scalar_lea.vmem [#allocation12], %s2391_s14 }
  0x61   : > { %3823 = dma.done.wait (%p4091_p7), %s357_s15, 1088  }
  0x62   : > { %3825 = vsyncadd (%p4091_p7), %s357_s15, 4294966208  ;;  %s2392_s2 = sshll.u32 %s338_s26, 6  ;;  %s415_s10 = sand.u32 1, %s3836_s19  }
  0x63   : > { %s2393_s25 = sshll.u32 %s415_s10, 5  ;;  %s4169_s27 = scalar_lea.vmem [#allocation14], %s2392_s2 }
  0x64   : > { %s4171_s1 = scalar_lea.vmem [#allocation15], %s2393_s25  ;;  %s4826_s8 = sld [smem:[#allocation25_spill]] }
  0x6a   : > { %p2394_p5 = scmp.ne.s32.totalorder %s4826_s8, 0 }
  0x6c   : > { %424 = sbr.rel (%p2394_p5) target bundleno = 118 (0x76), region = 64 }
  0x71   : > { %v3890_v0 = vmov 0   ;;  %v3891_v1 = vmov 0.0  }
  0x72   : > { %425 = vst [vmem:[#allocation4] sm:$0xf] %v3890_v0 }
  0x73   : > { %426 = vst [vmem:[#allocation4 + $0x4] sm:$0xf] %v3890_v0 }
  0x74   : > { %427 = vst [vmem:[#allocation5] sm:$0xff] %v3891_v1 }
  0x75   : > { %428 = vst [vmem:[#allocation5 + $0x8] sm:$0xff] %v3891_v1 }
  0x76 PF: > { %v2525_v2 = vld [vmem:[%s4152_s7 + $0xe0] sm:$0xf]  ;;  %v3147_v3 = vld [vmem:[%s4152_s7 + $0xec] sm:$0xf0]  ;;  %v3146_v4 = vld [vmem:[%s4152_s7 + $0xec] sm:$0xf] }
  0x77   : > { %v2526_v5 = vor.u32 %v3147_v3, %v2525_v2  ;;  %v2535_v6 = vld [vmem:[%s4152_s7 + $0xf8] sm:$0xf0]  ;;  %v2509_v7 = vld [vmem:[%s4152_s7 + $0xc0] sm:$0xf]  ;;  %v3143_v8 = vld [vmem:[%s4152_s7 + $0xcc] sm:$0xf0] }
  0x78   : > { %v2538_v9 = vor.u32 %v3146_v4, %v2535_v6  ;;  %v3142_v10 = vld [vmem:[%s4152_s7 + $0xcc] sm:$0xf]  ;;  %v2519_v11 = vld [vmem:[%s4152_s7 + $0xd8] sm:$0xf0]  ;;  %v2510_v12 = vor.u32 %v3143_v8, %v2509_v7  ;;  %v2493_v14 = vld [vmem:[%s4152_s7 + $0xa0] sm:$0xf] }
  0x79   : > { %663 = vmatpush.bf16.msra.mxu1 %v2526_v5  ;;  %3338 = vmatpush.bf16.msra.mxu2 %v2526_v5  ;;  %v2522_v13 = vor.u32 %v3142_v10, %v2519_v11  ;;  %v3139_v15 = vld [vmem:[%s4152_s7 + $0xac] sm:$0xf0]  ;;  %v3138_v16 = vld [vmem:[%s4152_s7 + $0xac] sm:$0xf]  ;;  %v2503_v17 = vld [vmem:[%s4152_s7 + $0xb8] sm:$0xf0] }
  0x7a   : > { %750 = vmatpush.bf16.msra.mxu3 %v2538_v9  ;;  %v2494_v18 = vor.u32 %v3139_v15, %v2493_v14  ;;  %v2506_v19 = vor.u32 %v3138_v16, %v2503_v17  ;;  %v2477_v20 = vld [vmem:[%s4152_s7 + $0x80] sm:$0xf]  ;;  %v3135_v21 = vld [vmem:[%s4152_s7 + $0x8c] sm:$0xf0]  ;;  %v3134_v22 = vld [vmem:[%s4152_s7 + $0x8c] sm:$0xf] }
  0x7b   : > { %v2487_v23 = vld [vmem:[%s4152_s7 + $0x98] sm:$0xf0]  ;;  %v2478_v24 = vor.u32 %v3135_v21, %v2477_v20  ;;  %v2461_v26 = vld [vmem:[%s4152_s7 + $0x60] sm:$0xf]  ;;  %v3131_v27 = vld [vmem:[%s4152_s7 + $0x6c] sm:$0xf0] }
  0x7c   : > { %v2490_v25 = vor.u32 %v3134_v22, %v2487_v23  ;;  %v3130_v28 = vld [vmem:[%s4152_s7 + $0x6c] sm:$0xf]  ;;  %v2471_v29 = vld [vmem:[%s4152_s7 + $0x78] sm:$0xf0]  ;;  %v2657_v30 = vld [vmem:[%s4158_s16 + $0xe0] sm:$0xf]  ;;  %v2462_v32 = vor.u32 %v3131_v27, %v2461_v26 }
  0x7d   : > { %664 = vmatpush.bf16.msra.mxu1 %v2510_v12  ;;  %3339 = vmatpush.bf16.msra.mxu2 %v2510_v12  ;;  %v3180_v31 = vld [vmem:[%s4158_s16 + $0xec] sm:$0xf0]  ;;  %v2445_v33 = vld [vmem:[%s4152_s7 + $0x40] sm:$0xf]  ;;  %v2474_v35 = vor.u32 %v3130_v28, %v2471_v29  ;;  %v3126_v39 = vld [vmem:[%s4152_s7 + $0x4c] sm:$0xf] }
  0x7e   : > { %751 = vmatpush.bf16.msra.mxu3 %v2522_v13  ;;  %v2658_v34 = vor.u32 %v3180_v31, %v2657_v30  ;;  %v3127_v36 = vld [vmem:[%s4152_s7 + $0x4c] sm:$0xf0]  ;;  %v2641_v37 = vld [vmem:[%s4158_s16 + $0xc0] sm:$0xf]  ;;  %v2455_v40 = vld [vmem:[%s4152_s7 + $0x58] sm:$0xf0] }
  0x7f   : > { %v3176_v38 = vld [vmem:[%s4158_s16 + $0xcc] sm:$0xf0]  ;;  %v2625_v42 = vld [vmem:[%s4158_s16 + $0xa0] sm:$0xf]  ;;  %v2446_v44 = vor.u32 %v3127_v36, %v2445_v33  ;;  %v2458_v45 = vor.u32 %v3126_v39, %v2455_v40  ;;  %v3122_v48 = vld [vmem:[%s4152_s7 + $0x2c] sm:$0xf] }
  0x80   : > { %1028 = vmatpush.bf16.msra.mxu0 %v2658_v34  ;;  %v2642_v41 = vor.u32 %v3176_v38, %v2641_v37  ;;  %v3172_v43 = vld [vmem:[%s4158_s16 + $0xac] sm:$0xf0]  ;;  %v2429_v46 = vld [vmem:[%s4152_s7 + $0x20] sm:$0xf]  ;;  %v2439_v49 = vld [vmem:[%s4152_s7 + $0x38] sm:$0xf0] }
  0x81   : > { %665 = vmatpush.bf16.msra.mxu1 %v2494_v18  ;;  %3340 = vmatpush.bf16.msra.mxu2 %v2494_v18  ;;  %v3123_v47 = vld [vmem:[%s4152_s7 + $0x2c] sm:$0xf0]  ;;  %v2626_v50 = vor.u32 %v3172_v43, %v2625_v42  ;;  %v2609_v51 = vld [vmem:[%s4158_s16 + $0x80] sm:$0xf]  ;;  %v2442_v55 = vor.u32 %v3122_v48, %v2439_v49  ;;  %v3118_v57 = vld [vmem:[%s4152_s7 + $0xc] sm:$0xf] }
  0x82   : > { %752 = vmatpush.bf16.msra.mxu3 %v2506_v19  ;;  %v3168_v52 = vld [vmem:[%s4158_s16 + $0x8c] sm:$0xf0]  ;;  %v2430_v53 = vor.u32 %v3123_v47, %v2429_v46  ;;  %v2413_v54 = vld [vmem:[%s4152_s7] sm:$0xf]  ;;  %v2423_v58 = vld [vmem:[%s4152_s7 + $0x18] sm:$0xf0] }
  0x83   : > { %v3119_v56 = vld [vmem:[%s4152_s7 + $0xc] sm:$0xf0]  ;;  %v2533_v59 = vld [vmem:[%s4152_s7 + $0xe8] sm:$0xf]  ;;  %v3148_v60 = vld [vmem:[%s4152_s7 + $0xf4] sm:$0xf0]  ;;  %v2610_v62 = vor.u32 %v3168_v52, %v2609_v51  ;;  %v2426_v3 = vor.u32 %v3118_v57, %v2423_v58 }
  0x84   : > { %1029 = vmatpush.bf16.msra.mxu0 %v2642_v41  ;;  %v3145_v61 = vld [vmem:[%s4152_s7 + $0xe4] sm:$0xf]  ;;  %v2527_v63 = vld [vmem:[%s4152_s7 + $0xf0] sm:$0xf0]  ;;  %v2593_v0 = vld [vmem:[%s4158_s16 + $0x60] sm:$0xf]  ;;  %v2414_v2 = vor.u32 %v3119_v56, %v2413_v54  ;;  %v2534_v6 = vor.u32 %v3148_v60, %v2533_v59 }
  0x85   : > { %666 = vmatpush.bf16.msra.mxu1 %v2478_v24  ;;  %3341 = vmatpush.bf16.msra.mxu2 %v2478_v24  ;;  %v3164_v1 = vld [vmem:[%s4158_s16 + $0x6c] sm:$0xf0]  ;;  %v4221_v4 = vld [vmem:[%s4144_s18] sm:$0xff]  ;;  %v2530_v7 = vor.u32 %v3145_v61, %v2527_v63  ;;  %v2517_v8 = vld [vmem:[%s4152_s7 + $0xc8] sm:$0xf]  ;;  %s4827_s3 = sld [smem:[#allocation25_spill]] }
  0x86   : > { %753 = vmatpush.bf16.msra.mxu3 %v2490_v25  ;;  %v4224_v5 = vld [vmem:[%s4144_s18 + $0x10] sm:$0xff]  ;;  %v3144_v9 = vld [vmem:[%s4152_s7 + $0xd4] sm:$0xf0]  ;;  %v3141_v10 = vld [vmem:[%s4152_s7 + $0xc4] sm:$0xf]  ;;  %v2594_v11 = vor.u32 %v3164_v1, %v2593_v0  ;;  %s4828_s13 = sld [smem:[#allocation26_spill]] }
  0x87   : > { %v2511_v12 = vld [vmem:[%s4152_s7 + $0xd0] sm:$0xf0]  ;;  %v2577_v13 = vld [vmem:[%s4158_s16 + $0x40] sm:$0xf]  ;;  %v3160_v14 = vld [vmem:[%s4158_s16 + $0x4c] sm:$0xf0]  ;;  %v2518_v15 = vor.u32 %v3144_v9, %v2517_v8 }
  0x88   : > { %1030 = vmatpush.bf16.msra.mxu0 %v2626_v50  ;;  %v2501_v16 = vld [vmem:[%s4152_s7 + $0xa8] sm:$0xf]  ;;  %v3140_v17 = vld [vmem:[%s4152_s7 + $0xb4] sm:$0xf0]  ;;  %v2514_v18 = vor.u32 %v3141_v10, %v2511_v12  ;;  %v3137_v19 = vld [vmem:[%s4152_s7 + $0xa4] sm:$0xf]  ;;  %v2578_v20 = vor.u32 %v3160_v14, %v2577_v13 }
  0x89   : > { %667 = vmatpush.bf16.msra.mxu1 %v2462_v32  ;;  %3342 = vmatpush.bf16.msra.mxu2 %v2462_v32  ;;  %v3179_v21 = vld [vmem:[%s4158_s16 + $0xec] sm:$0xf]  ;;  %v2667_v22 = vld [vmem:[%s4158_s16 + $0xf8] sm:$0xf0]  ;;  %v2495_v23 = vld [vmem:[%s4152_s7 + $0xb0] sm:$0xf0]  ;;  %v2502_v27 = vor.u32 %v3140_v17, %v2501_v16 }
  0x8a   : > { %754 = vmatpush.bf16.msra.mxu3 %v2474_v35  ;;  %v2561_v24 = vld [vmem:[%s4158_s16 + $0x20] sm:$0xf]  ;;  %v3156_v25 = vld [vmem:[%s4158_s16 + $0x2c] sm:$0xf0]  ;;  %v2670_v26 = vor.u32 %v3179_v21, %v2667_v22  ;;  %v2485_v28 = vld [vmem:[%s4152_s7 + $0x88] sm:$0xf]  ;;  %v2498_v31 = vor.u32 %v3137_v19, %v2495_v23 }
  0x8b   : > { %v3136_v29 = vld [vmem:[%s4152_s7 + $0x94] sm:$0xf0]  ;;  %v3133_v30 = vld [vmem:[%s4152_s7 + $0x84] sm:$0xf]  ;;  %v2479_v32 = vld [vmem:[%s4152_s7 + $0x90] sm:$0xf0]  ;;  %v2562_v33 = vor.u32 %v3156_v25, %v2561_v24 }
  0x8c   : > { %1031 = vmatpush.bf16.msra.mxu0 %v2610_v62  ;;  %v3175_v34 = vld [vmem:[%s4158_s16 + $0xcc] sm:$0xf]  ;;  %v2651_v35 = vld [vmem:[%s4158_s16 + $0xd8] sm:$0xf0]  ;;  %v2545_v36 = vld [vmem:[%s4158_s16] sm:$0xf]  ;;  %v2486_v41 = vor.u32 %v3136_v29, %v2485_v28  ;;  %v2482_v43 = vor.u32 %v3133_v30, %v2479_v32 }
  0x8d   : > { %668 = vmatpush.bf16.msra.mxu1 %v2446_v44  ;;  %3343 = vmatpush.bf16.msra.mxu2 %v2446_v44  ;;  %v3152_v37 = vld [vmem:[%s4158_s16 + $0xc] sm:$0xf0]  ;;  %v2654_v38 = vor.u32 %v3175_v34, %v2651_v35  ;;  %v3171_v39 = vld [vmem:[%s4158_s16 + $0xac] sm:$0xf]  ;;  %v2635_v40 = vld [vmem:[%s4158_s16 + $0xb8] sm:$0xf0] }
  0x8e   : > { %755 = vmatpush.bf16.msra.mxu3 %v2458_v45  ;;  %v2638_v42 = vor.u32 %v3171_v39, %v2635_v40  ;;  %v2469_v44 = vld [vmem:[%s4152_s7 + $0x68] sm:$0xf]  ;;  %v3132_v45 = vld [vmem:[%s4152_s7 + $0x74] sm:$0xf0]  ;;  %v3129_v46 = vld [vmem:[%s4152_s7 + $0x64] sm:$0xf]  ;;  %v2546_v47 = vor.u32 %v3152_v37, %v2545_v36 }
  0x8f   : > { %v2463_v48 = vld [vmem:[%s4152_s7 + $0x70] sm:$0xf0]  ;;  %v3167_v49 = vld [vmem:[%s4158_s16 + $0x8c] sm:$0xf]  ;;  %v2619_v50 = vld [vmem:[%s4158_s16 + $0x98] sm:$0xf0]  ;;  %v2470_v51 = vor.u32 %v3132_v45, %v2469_v44 }
  0x90   : > { %1032 = vmatpush.bf16.msra.mxu0 %v2594_v11  ;;  %v4259_v52 = vld [vmem:[#allocation4] sm:$0xff]  ;;  %v2466_v54 = vor.u32 %v3129_v46, %v2463_v48  ;;  %v3128_v56 = vld [vmem:[%s4152_s7 + $0x54] sm:$0xf0]  ;;  %v2622_v57 = vor.u32 %v3167_v49, %v2619_v50  ;;  %v3125_v59 = vld [vmem:[%s4152_s7 + $0x44] sm:$0xf]  ;;  %s3104_s5 = sshll.u32 %s4827_s3, 3 }
  0x91   : > { %669 = vmatpush.bf16.msra.mxu1 %v2430_v53  ;;  %3344 = vmatpush.bf16.msra.mxu2 %v2430_v53  ;;  %v4262_v53 = vld [vmem:[%s4144_s18 + $0x8] sm:$0xff]  ;;  %v4267_v58 = vld [vmem:[%s4144_s18 + $0x18] sm:$0xff]  ;;  %v2447_v60 = vld [vmem:[%s4152_s7 + $0x50] sm:$0xf0]  ;;  %s3105_s24 = sshll.u32 %s4828_s13, 4  ;;  %s4829_s17 = sld [smem:[#allocation40_spill]] }
  0x92   : > { %756 = vmatpush.bf16.msra.mxu3 %v2442_v55  ;;  %v2453_v55 = vld [vmem:[%s4152_s7 + $0x48] sm:$0xf]  ;;  %v2450_v63 = vor.u32 %v3125_v59, %v2447_v60  ;;  %v3124_v0 = vld [vmem:[%s4152_s7 + $0x34] sm:$0xf0]  ;;  %v3163_v1 = vld [vmem:[%s4158_s16 + $0x6c] sm:$0xf]  ;;  %s2187_s11 = sadd.s32 %s3105_s24, %s3104_s5 }
  0x93   : > { %v2454_v61 = vor.u32 %v3128_v56, %v2453_v55  ;;  %v2437_v62 = vld [vmem:[%s4152_s7 + $0x28] sm:$0xf]  ;;  %v3159_v10 = vld [vmem:[%s4158_s16 + $0x4c] sm:$0xf]  ;;  %v2587_v11 = vld [vmem:[%s4158_s16 + $0x58] sm:$0xf0] }
  0x94   : > { %1033 = vmatpush.bf16.msra.mxu0 %v2578_v20  ;;  %v2438_v8 = vor.u32 %v3124_v0, %v2437_v62  ;;  %v2421_v9 = vld [vmem:[%s4152_s7 + $0x8] sm:$0xf]  ;;  %v3120_v13 = vld [vmem:[%s4152_s7 + $0x14] sm:$0xf0]  ;;  %v3117_v14 = vld [vmem:[%s4152_s7 + $0x4] sm:$0xf]  ;;  %v2590_v16 = vor.u32 %v3159_v10, %v2587_v11 }
  0x95   : > { %670 = vmatpush.bf16.msra.mxu1 %v2414_v2  ;;  %3345 = vmatpush.bf16.msra.mxu2 %v2414_v2  ;;  %v2603_v2 = vld [vmem:[%s4158_s16 + $0x78] sm:$0xf0]  ;;  %v2665_v17 = vld [vmem:[%s4158_s16 + $0xe8] sm:$0xf]  ;;  %v3178_v19 = vld [vmem:[%s4158_s16 + $0xe4] sm:$0xf]  ;;  %v2422_v23 = vor.u32 %v3120_v13, %v2421_v9 }
  0x96   : > { %757 = vmatpush.bf16.msra.mxu3 %v2426_v3  ;;  %v3121_v3 = vld [vmem:[%s4152_s7 + $0x24] sm:$0xf]  ;;  %v2659_v20 = vld [vmem:[%s4158_s16 + $0xf0] sm:$0xf0]  ;;  %v3155_v21 = vld [vmem:[%s4158_s16 + $0x2c] sm:$0xf] }
  0x97   : > { %v2571_v22 = vld [vmem:[%s4158_s16 + $0x38] sm:$0xf0]  ;;  %v3177_v28 = vld [vmem:[%s4158_s16 + $0xd4] sm:$0xf0]  ;;  %v3174_v30 = vld [vmem:[%s4158_s16 + $0xc4] sm:$0xf] }
  0x98   : > { %671 = vmatmul.bf16.vlgmr.msra.gmra.mxu1 %v4221_v4  ;;  %681 = vmatmul.bf16.vlgmr.msra.gmra.mxu2 %v4224_v5  ;;  %v2574_v29 = vor.u32 %v3155_v21, %v2571_v22  ;;  %v2555_v34 = vld [vmem:[%s4158_s16 + $0x18] sm:$0xf0]  ;;  %v2633_v35 = vld [vmem:[%s4158_s16 + $0xa8] sm:$0xf]  ;;  %v3173_v36 = vld [vmem:[%s4158_s16 + $0xb4] sm:$0xf0] }
  0x99   : > { %721 = vmatpush.bf16.msrb.mxu2 %v2534_v6  ;;  %692 = vmatpush.bf16.msrb.mxu1 %v2530_v7  ;;  %v2431_v6 = vld [vmem:[%s4152_s7 + $0x30] sm:$0xf0]  ;;  %v2606_v7 = vor.u32 %v3163_v1, %v2603_v2  ;;  %v3166_v45 = vld [vmem:[%s4158_s16 + $0x84] sm:$0xf]  ;;  %v2601_v48 = vld [vmem:[%s4158_s16 + $0x68] sm:$0xf] }
  0x9a   : > { %758 = vmatmul.bf16.vlgmr.msra.gmra.mxu3 %v4221_v4  ;;  %1034 = vmatpush.bf16.msra.mxu0 %v2562_v33  ;;  %v2434_v12 = vor.u32 %v3121_v3, %v2431_v6  ;;  %v3151_v33 = vld [vmem:[%s4158_s16 + $0xc] sm:$0xf]  ;;  %v2627_v39 = vld [vmem:[%s4158_s16 + $0xb0] sm:$0xf0]  ;;  %v3165_v49 = vld [vmem:[%s4158_s16 + $0x74] sm:$0xf0] }
  0x9b   : > { %1070 = vmatpush.bf16.msrb.mxu3 %v2670_v26  ;;  %v2662_v26 = vor.u32 %v3178_v19, %v2659_v20  ;;  %v2558_v40 = vor.u32 %v3151_v33, %v2555_v34  ;;  %v2611_v46 = vld [vmem:[%s4158_s16 + $0x90] sm:$0xf0]  ;;  %v3162_v50 = vld [vmem:[%s4158_s16 + $0x64] sm:$0xf]  ;;  %v2585_v55 = vld [vmem:[%s4158_s16 + $0x48] sm:$0xf] }
  0x9c   : > { %v3161_v56 = vld [vmem:[%s4158_s16 + $0x54] sm:$0xf0]  ;;  %v3158_v59 = vld [vmem:[%s4158_s16 + $0x44] sm:$0xf]  ;;  %v2579_v60 = vld [vmem:[%s4158_s16 + $0x50] sm:$0xf0] }
  0x9d   : > { %722 = vmatpush.bf16.msrb.mxu2 %v2518_v15  ;;  %693 = vmatpush.bf16.msrb.mxu1 %v2514_v18  ;;  %v2415_v15 = vld [vmem:[%s4152_s7 + $0x10] sm:$0xf0]  ;;  %v3181_v18 = vld [vmem:[%s4158_s16 + $0xf4] sm:$0xf0]  ;;  %v2582_v62 = vor.u32 %v3158_v59, %v2579_v60  ;;  %v3154_v1 = vld [vmem:[%s4158_s16 + $0x24] sm:$0xf] }
  0x9e   : > { %1035 = vmatpush.bf16.msra.mxu0 %v2546_v47  ;;  %v2418_v24 = vor.u32 %v3117_v14, %v2415_v15  ;;  %v2666_v25 = vor.u32 %v3181_v18, %v2665_v17  ;;  %v3157_v0 = vld [vmem:[%s4158_s16 + $0x34] sm:$0xf0]  ;;  %v2563_v3 = vld [vmem:[%s4158_s16 + $0x30] sm:$0xf0]  ;;  %v2553_v6 = vld [vmem:[%s4158_s16 + $0x8] sm:$0xf] }
  0x9f   : > { %1071 = vmatpush.bf16.msrb.mxu3 %v2654_v38  ;;  %v3170_v38 = vld [vmem:[%s4158_s16 + $0xa4] sm:$0xf]  ;;  %v2547_v10 = vld [vmem:[%s4158_s16 + $0x10] sm:$0xf0]  ;;  %s3106_s9 = sshll.u32 %s2187_s11, 2  ;;  %s2190_s18 = sshll.u32 %s4171_s1, 4  ;;  %s2191_s18 = int_to_ptr.vmem [resolvable:$true] %s2190_s18 }
  0xa0   : > { %v2630_v44 = vor.u32 %v3170_v38, %v2627_v39  ;;  %v3150_v9 = vld [vmem:[%s4158_s16 + $0x4] sm:$0xf]  ;;  %s2189_s4 = scalar_lea.hbm %s4829_s17, %s3106_s9  ;;  %s2176_s26 = scalar_lea.sflag [#allocation8], %s415_s10 }
  0xa1   : > { %723 = vmatpush.bf16.msrb.mxu2 %v2502_v27  ;;  %694 = vmatpush.bf16.msrb.mxu1 %v2498_v31  ;;  %v2649_v27 = vld [vmem:[%s4158_s16 + $0xc8] sm:$0xf]  ;;  %v2643_v31 = vld [vmem:[%s4158_s16 + $0xd0] sm:$0xf0]  ;;  %v469_v13 = vld [vmem:[%s4160_s12] sm:$0xf] }
  0xa2   : > { %1036 = vmatmul.bf16.vlgmr.msra.gmra.mxu0 %v4259_v52  ;;  %v2650_v32 = vor.u32 %v3177_v28, %v2649_v27  ;;  %v2646_v37 = vor.u32 %v3174_v30, %v2643_v31  ;;  %v4337_v14 = vperm.slane %v469_v13, 0  ;;  %v4355_v28 = vperm.slane %v469_v13, 1  ;;  %s2192_s0 = sshll.u32 %s2189_s4, 4  ;;  %s2193_s0 = int_to_ptr.hbm [resolvable:$true] %s2192_s0 }
  0xa3   : > { %1072 = vmatpush.bf16.msrb.mxu3 %v2638_v42  ;;  %v2617_v42 = vld [vmem:[%s4158_s16 + $0x88] sm:$0xf]  ;;  %s3744_s28 = sshra.s32 %s2193_s0, 4  ;;  %s3745_s28 = int_to_ptr.hbm [resolvable:$true] %s3744_s28 }
  0xa4   : > { %s3746_s29 = scalar_lea.hbm %s3745_s28, 32  ;;  %p3751_p7 = scmp.lt.s32.totalorder %s3745_s28, %s4829_s17 }
  0xa5   : > { %724 = vmatpush.bf16.msrb.mxu2 %v2486_v41  ;;  %695 = vmatpush.bf16.msrb.mxu1 %v2482_v43  ;;  %v2634_v41 = vor.u32 %v3173_v36, %v2633_v35  ;;  %v3169_v43 = vld [vmem:[%s4158_s16 + $0x94] sm:$0xf0]  ;;  %p3747_p8 = scmp.ne.s32.totalorder %s3745_s28, %s3746_s29 }
  0xa6   : > { %v2618_v47 = vor.u32 %v3169_v43, %v2617_v42 }
  0xa7   : > { %1073 = vmatpush.bf16.msrb.mxu3 %v2622_v57  ;;  %p3748_p12 = pnand %p3747_p8, %p4108_p3 }
  0xa8   : > { %676 = vmatmul.bf16.gmra.mxu1 %v4262_v53  ;;  %686 = vmatmul.bf16.gmra.mxu2 %v4267_v58 }
  0xa9   : > { %725 = vmatpush.bf16.msrb.mxu2 %v2470_v51  ;;  %696 = vmatpush.bf16.msrb.mxu1 %v2466_v54  ;;  %v2595_v51 = vld [vmem:[%s4158_s16 + $0x70] sm:$0xf0]  ;;  %v2602_v54 = vor.u32 %v3165_v49, %v2601_v48  ;;  %p3749_p6 = pneg %p3748_p12 }
  0xaa   : > { %763 = vmatmul.bf16.gmra.mxu3 %v4262_v53  ;;  %v2598_v57 = vor.u32 %v3162_v50, %v2595_v51 }
  0xab   : > { %1074 = vmatpush.bf16.msrb.mxu3 %v2606_v7  ;;  %v3153_v7 = vld [vmem:[%s4158_s16 + $0x14] sm:$0xf0] }
  0xac   : > { %v2554_v11 = vor.u32 %v3153_v7, %v2553_v6 }
  0xad   : > { %726 = vmatpush.bf16.msrb.mxu2 %v2454_v61  ;;  %697 = vmatpush.bf16.msrb.mxu1 %v2450_v63  ;;  %v2586_v61 = vor.u32 %v3161_v56, %v2585_v55  ;;  %v2569_v63 = vld [vmem:[%s4158_s16 + $0x28] sm:$0xf] }
  0xae   : > { %v2570_v2 = vor.u32 %v3157_v0, %v2569_v63 }
  0xaf   : > { %1075 = vmatpush.bf16.msrb.mxu3 %v2590_v16 }
  0xb1   : > { %727 = vmatpush.bf16.msrb.mxu2 %v2438_v8  ;;  %698 = vmatpush.bf16.msrb.mxu1 %v2434_v12  ;;  %v2566_v8 = vor.u32 %v3154_v1, %v2563_v3  ;;  %v2550_v12 = vor.u32 %v3150_v9, %v2547_v10  ;;  %v2785_v9 = vld [vmem:[%s4158_s16 + $0xe0] sm:$0xf]  ;;  %v3212_v10 = vld [vmem:[%s4158_s16 + $0xec] sm:$0xf0] }
  0xb3   : > { %1076 = vmatpush.bf16.msrb.mxu3 %v2574_v29 }
  0xb5   : > { %728 = vmatpush.bf16.msrb.mxu2 %v2422_v23  ;;  %699 = vmatpush.bf16.msrb.mxu1 %v2418_v24 }
  0xb7   : > { %1077 = vmatpush.bf16.msrb.mxu3 %v2558_v40 }
  0xb8   : > { %700 = vmatmul.bf16.vlgmr.msrb.gmra.mxu1 %v4221_v4  ;;  %729 = vmatmul.bf16.vlgmr.msrb.gmra.mxu2 %v4221_v4  ;;  %v2614_v4 = vor.u32 %v3166_v45, %v2611_v46 }
  0xb9   : > { %1056 = vmatpush.bf16.msra.mxu2 %v2666_v25  ;;  %1042 = vmatpush.bf16.msra.mxu1 %v2662_v26 }
  0xba   : > { %768 = vmatmul.bf16.gmra.mxu3 %v4224_v5 }
  0xbd   : > { %1057 = vmatpush.bf16.msra.mxu2 %v2650_v32  ;;  %1043 = vmatpush.bf16.msra.mxu1 %v2646_v37 }
  0xc1   : > { %1058 = vmatpush.bf16.msra.mxu2 %v2634_v41  ;;  %1044 = vmatpush.bf16.msra.mxu1 %v2630_v44 }
  0xc5   : > { %1059 = vmatpush.bf16.msra.mxu2 %v2618_v47  ;;  %1045 = vmatpush.bf16.msra.mxu1 %v2614_v4  ;;  %v4376_v47 = vperm.slane %v469_v13, 2 }
  0xc8   : > { %705 = vmatmul.bf16.gmra.mxu1 %v4262_v53  ;;  %734 = vmatmul.bf16.gmra.mxu2 %v4262_v53 }
  0xc9   : > { %1060 = vmatpush.bf16.msra.mxu2 %v2602_v54  ;;  %1046 = vmatpush.bf16.msra.mxu1 %v2598_v57 }
  0xca   : > { %773 = vmatmul.bf16.gmra.mxu3 %v4267_v58 }
  0xcd   : > { %1061 = vmatpush.bf16.msra.mxu2 %v2586_v61  ;;  %1047 = vmatpush.bf16.msra.mxu1 %v2582_v62 }
  0xd1   : > { %1062 = vmatpush.bf16.msra.mxu2 %v2570_v2  ;;  %1048 = vmatpush.bf16.msra.mxu1 %v2566_v8 }
  0xd5   : > { %1063 = vmatpush.bf16.msra.mxu2 %v2554_v11  ;;  %1049 = vmatpush.bf16.msra.mxu1 %v2550_v12  ;;  %v3210_v11 = vld [vmem:[%s4158_s16 + $0xe4] sm:$0xf] }
  0xd8   : > { %710 = vmatmul.bf16.gmra.mxu1 %v4224_v5  ;;  %739 = vmatmul.bf16.gmra.mxu2 %v4224_v5 }
  0xda   : > { %1078 = vmatmul.bf16.vlgmr.msrb.gmra.mxu3 %v4259_v52 }
  0xe8   : > { %715 = vmatmul.bf16.gmra.mxu1 %v4267_v58  ;;  %744 = vmatmul.bf16.gmra.mxu2 %v4267_v58 }
  0xf8   : > { %1050 = vmatmul.bf16.vlgmr.msra.gmra.mxu1 %v4259_v52  ;;  %1064 = vmatmul.bf16.vlgmr.msra.gmra.mxu2 %v4259_v52  ;;  %v4348_v52 = vperm.slane %v469_v13, 3  ;;  %v2787_v13 = vld [vmem:[%s4158_s16 + $0xf0] sm:$0xf0] }
 0x115   : > { %v672_v53 = vpop.f32.mrf.mxu1 }
 0x116   : > { %v673_v34 = vadd.f32 %v672_v53, %v4337_v14  ;;  %v2786_v53 = vor.u32 %v3212_v10, %v2785_v9  ;;  %v3200_v10 = vld [vmem:[%s4158_s16 + $0x8c] sm:$0xf0] }
 0x118   : > { %1331 = vmatpush.bf16.msrb.mxu0 %v2786_v53 }
 0x11b   : > { %v682_v15 = vpop.f32.mrf.mxu2 }
 0x11c   : > { %v683_v16 = vadd.f32 %v682_v15, %v4337_v14  ;;  %v2793_v15 = vld [vmem:[%s4158_s16 + $0xe8] sm:$0xf] }
 0x11d   : > { %v4340_v17 = vpop.f32.mrf.mxu3  ;;  %v4342_v5 = vpop.f32.mrf.mxu1 }
 0x11f   : > { %v1037_v53 = vpop.f32.mrf.mxu0 }
 0x123   : > { %v684_v18 = vpop.f32.mrf.mxu2 }
 0x124   : > { %v685_v19 = vadd.f32 %v684_v18, %v4337_v14  ;;  %v2790_v18 = vor.u32 %v3210_v11, %v2787_v13  ;;  %v3198_v11 = vld [vmem:[%s4158_s16 + $0x84] sm:$0xf] }
 0x125   : > { %v4345_v20 = vpop.f32.mrf.mxu3  ;;  %v677_v58 = vpop.f32.mrf.mxu1 }
 0x126   : > { %v678_v21 = vadd.f32 %v677_v58, %v4337_v14  ;;  %1345 = vmatpush.bf16.msrb.mxu1 %v2790_v18  ;;  %v2745_v18 = vld [vmem:[%s4158_s16 + $0x88] sm:$0xf] }
 0x12b   : > { %v687_v22 = vpop.f32.mrf.mxu2 }
 0x12c   : > { %v4351_v23 = vadd.f32 %v687_v22, %v4337_v14  ;;  %v2795_v22 = vld [vmem:[%s4158_s16 + $0xf8] sm:$0xf0] }
 0x12d   : > { %v764_v24 = vpop.f32.mrf.mxu3  ;;  %v679_v26 = vpop.f32.mrf.mxu1 }
 0x12e   : > { %v765_v25 = vadd.f32 %v764_v24, %v4348_v52  ;;  %v680_v27 = vadd.f32 %v679_v26, %v4337_v14  ;;  %v3208_v26 = vld [vmem:[%s4158_s16 + $0xcc] sm:$0xf0] }
 0x133   : > { %v689_v29 = vpop.f32.mrf.mxu2 }
 0x134   : > { %v4358_v30 = vadd.f32 %v689_v29, %v4337_v14 }
 0x135   : > { %v766_v31 = vpop.f32.mrf.mxu3  ;;  %v701_v33 = vpop.f32.mrf.mxu1 }
 0x136   : > { %v767_v32 = vadd.f32 %v766_v31, %v4348_v52  ;;  %v702_v35 = vadd.f32 %v701_v33, %v4355_v28  ;;  %v2777_v33 = vld [vmem:[%s4158_s16 + $0xc8] sm:$0xf] }
 0x138   : > { %v4363_v36 = vpack.c.bf16 %v702_v35, %v673_v34  ;;  %v3209_v34 = vld [vmem:[%s4158_s16 + $0xd4] sm:$0xf0] }
 0x13b   : > { %v4365_v37 = vpop.f32.mrf.mxu2 }
 0x13d   : > { %v769_v38 = vpop.f32.mrf.mxu3  ;;  %v4368_v40 = vpop.f32.mrf.mxu1 }
 0x13e   : > { %v770_v39 = vadd.f32 %v769_v38, %v4348_v52 }
 0x143   : > { %v4370_v41 = vpop.f32.mrf.mxu2 }
 0x145   : > { %v771_v42 = vpop.f32.mrf.mxu3  ;;  %v706_v44 = vpop.f32.mrf.mxu1 }
 0x146   : > { %v772_v43 = vadd.f32 %v771_v42, %v4348_v52  ;;  %v707_v45 = vadd.f32 %v706_v44, %v4355_v28  ;;  %v3207_v42 = vld [vmem:[%s4158_s16 + $0xcc] sm:$0xf]  ;;  %v2779_v44 = vld [vmem:[%s4158_s16 + $0xd8] sm:$0xf0] }
 0x148   : > { %v4374_v46 = vpack.c.bf16 %v707_v45, %v678_v21  ;;  %v3211_v21 = vld [vmem:[%s4158_s16 + $0xec] sm:$0xf] }
 0x149   : > { %v2798_v24 = vor.u32 %v3211_v21, %v2795_v22  ;;  %v704_v21 = vadd.f32 %v4368_v40, %v4355_v28  ;;  %v675_v40 = vadd.f32 %v4342_v5, %v4337_v14  ;;  %v731_v14 = vadd.f32 %v4365_v37, %v4376_v47  ;;  %v3190_v37 = vld [vmem:[%s4158_s16 + $0x44] sm:$0xf] }
 0x14b   : > { %v735_v48 = vpop.f32.mrf.mxu2  ;;  %1373 = vmatpush.bf16.msra.mxu3 %v2798_v24  ;;  %v4463_v5 = vpack.c.bf16 %v704_v21, %v675_v40  ;;  %v1039_v21 = vpop.f32.mrf.mxu0  ;;  %v2673_v40 = vld [vmem:[%s4158_s16] sm:$0xf] }
 0x14c   : > { %v736_v49 = vadd.f32 %v735_v48, %v4376_v47 }
 0x14d   : > { %v774_v4 = vpop.f32.mrf.mxu3  ;;  %v708_v51 = vpop.f32.mrf.mxu1 }
 0x14e   : > { %v4380_v50 = vadd.f32 %v774_v4, %v4348_v52  ;;  %v4382_v54 = vpack.c.bf16 %v765_v25, %v736_v49  ;;  %v709_v55 = vadd.f32 %v708_v51, %v4355_v28  ;;  %v2782_v49 = vor.u32 %v3207_v42, %v2779_v44  ;;  %v2753_v4 = vld [vmem:[%s4158_s16 + $0xa0] sm:$0xf]  ;;  %v3204_v51 = vld [vmem:[%s4158_s16 + $0xac] sm:$0xf0]  ;;  %v3197_v44 = vld [vmem:[%s4158_s16 + $0x74] sm:$0xf0] }
 0x14f   : > { %v760_v42 = vadd.f32 %v4340_v17, %v4348_v52  ;;  %v2705_v17 = vld [vmem:[%s4158_s16 + $0x40] sm:$0xf] }
 0x150   : > { %v4385_v56 = vpack.c.bf16 %v709_v55, %v680_v27  ;;  %v3206_v27 = vld [vmem:[%s4158_s16 + $0xc4] sm:$0xf]  ;;  %1374 = vmatpush.bf16.msra.mxu3 %v2782_v49  ;;  %v2731_v49 = vld [vmem:[%s4158_s16 + $0x78] sm:$0xf0] }
 0x151   : > { %v3202_v55 = vld [vmem:[%s4158_s16 + $0xa4] sm:$0xf] }
 0x153   : > { %v737_v57 = vpop.f32.mrf.mxu2 }
 0x154   : > { %v738_v59 = vadd.f32 %v737_v57, %v4376_v47 }
 0x155   : > { %v776_v60 = vpop.f32.mrf.mxu3  ;;  %v711_v62 = vpop.f32.mrf.mxu1 }
 0x156   : > { %v4389_v61 = vadd.f32 %v776_v60, %v4348_v52  ;;  %v4391_v63 = vpack.c.bf16 %v767_v32, %v738_v59  ;;  %v712_v0 = vadd.f32 %v711_v62, %v4355_v28  ;;  %v2771_v32 = vld [vmem:[%s4158_s16 + $0xd0] sm:$0xf0]  ;;  %v2761_v60 = vld [vmem:[%s4158_s16 + $0xa8] sm:$0xf] }
 0x157   : > { %v2774_v38 = vor.u32 %v3206_v27, %v2771_v32  ;;  %v2755_v59 = vld [vmem:[%s4158_s16 + $0xb0] sm:$0xf0]  ;;  %v854_v27 = vunpack.c.l.bf16 %v4363_v36 }
 0x158   : > { %v4394_v1 = vpack.c.bf16 %v712_v0, %v683_v16  ;;  %v3213_v16 = vld [vmem:[%s4158_s16 + $0xf4] sm:$0xf0]  ;;  %v2758_v62 = vor.u32 %v3202_v55, %v2755_v59 }
 0x159   : > { %v2794_v58 = vor.u32 %v3213_v16, %v2793_v15  ;;  %1346 = vmatpush.bf16.msrb.mxu1 %v2774_v38  ;;  %v3205_v0 = vld [vmem:[%s4158_s16 + $0xb4] sm:$0xf0]  ;;  %v2739_v16 = vld [vmem:[%s4158_s16 + $0x90] sm:$0xf0] }
 0x15a   : > { %v2742_v24 = vor.u32 %v3198_v11, %v2739_v16  ;;  %v2689_v11 = vld [vmem:[%s4158_s16 + $0x20] sm:$0xf] }
 0x15b   : > { %v740_v2 = vpop.f32.mrf.mxu2  ;;  %1359 = vmatpush.bf16.msrb.mxu2 %v2794_v58  ;;  %v3201_v58 = vld [vmem:[%s4158_s16 + $0x94] sm:$0xf0] }
 0x15c   : > { %v741_v3 = vadd.f32 %v740_v2, %v4376_v47  ;;  %v3203_v2 = vld [vmem:[%s4158_s16 + $0xac] sm:$0xf] }
 0x15d   : > { %v713_v6 = vpop.f32.mrf.mxu1  ;;  %1347 = vmatpush.bf16.msrb.mxu1 %v2758_v62  ;;  %v2707_v62 = vld [vmem:[%s4158_s16 + $0x50] sm:$0xf0] }
 0x15e   : > { %v4397_v7 = vpack.c.bf16 %v770_v39, %v741_v3  ;;  %v714_v8 = vadd.f32 %v713_v6, %v4355_v28  ;;  %v2778_v39 = vor.u32 %v3209_v34, %v2777_v33  ;;  %v2762_v3 = vor.u32 %v3205_v0, %v2761_v60  ;;  %v2763_v6 = vld [vmem:[%s4158_s16 + $0xb8] sm:$0xf0]  ;;  %v2721_v33 = vld [vmem:[%s4158_s16 + $0x60] sm:$0xf]  ;;  %v3196_v34 = vld [vmem:[%s4158_s16 + $0x6c] sm:$0xf0] }
 0x15f   : > { %v2766_v9 = vor.u32 %v3203_v2, %v2763_v6  ;;  %v2713_v0 = vld [vmem:[%s4158_s16 + $0x48] sm:$0xf]  ;;  %v3193_v2 = vld [vmem:[%s4158_s16 + $0x54] sm:$0xf0]  ;;  %v855_v6 = vunpack.c.h.bf16 %v4363_v36  ;;  %v3186_v36 = vld [vmem:[%s4158_s16 + $0x24] sm:$0xf] }
 0x160   : > { %v4403_v12 = vpack.c.bf16 %v714_v8, %v685_v19  ;;  %v2769_v19 = vld [vmem:[%s4158_s16 + $0xc0] sm:$0xf]  ;;  %1360 = vmatpush.bf16.msrb.mxu2 %v2778_v39  ;;  %v2729_v39 = vld [vmem:[%s4158_s16 + $0x68] sm:$0xf] }
 0x161   : > { %v2770_v31 = vor.u32 %v3208_v26, %v2769_v19  ;;  %1375 = vmatpush.bf16.msra.mxu3 %v2766_v9  ;;  %v3199_v19 = vld [vmem:[%s4158_s16 + $0x8c] sm:$0xf]  ;;  %v2747_v26 = vld [vmem:[%s4158_s16 + $0x98] sm:$0xf0]  ;;  %1348 = vmatpush.bf16.msrb.mxu1 %v2742_v24  ;;  %v2714_v9 = vor.u32 %v3193_v2, %v2713_v0 }
 0x162   : > { %v2750_v32 = vor.u32 %v3199_v19, %v2747_v26  ;;  %v2697_v19 = vld [vmem:[%s4158_s16 + $0x28] sm:$0xf]  ;;  %v3189_v26 = vld [vmem:[%s4158_s16 + $0x34] sm:$0xf0] }
 0x163   : > { %v742_v25 = vpop.f32.mrf.mxu2  ;;  %1332 = vmatpush.bf16.msrb.mxu0 %v2770_v31 }
 0x164   : > { %v743_v29 = vadd.f32 %v742_v25, %v4376_v47  ;;  %1361 = vmatpush.bf16.msrb.mxu2 %v2762_v3  ;;  %v2746_v25 = vor.u32 %v3201_v58, %v2745_v18  ;;  %v3188_v18 = vld [vmem:[%s4158_s16 + $0x2c] sm:$0xf0]  ;;  %v2691_v58 = vld [vmem:[%s4158_s16 + $0x30] sm:$0xf0] }
 0x165   : > { %v716_v35 = vpop.f32.mrf.mxu1  ;;  %1376 = vmatpush.bf16.msra.mxu3 %v2750_v32  ;;  %v2699_v32 = vld [vmem:[%s4158_s16 + $0x38] sm:$0xf0] }
 0x166   : > { %v4419_v45 = vpack.c.bf16 %v772_v43, %v743_v29  ;;  %v717_v48 = vadd.f32 %v716_v35, %v4355_v28  ;;  %v2754_v43 = vor.u32 %v3204_v51, %v2753_v4  ;;  %v3194_v35 = vld [vmem:[%s4158_s16 + $0x64] sm:$0xf]  ;;  %v1038_v4 = vadd.f32 %v1037_v53, %v854_v27  ;;  %v3187_v27 = vld [vmem:[%s4158_s16 + $0x2c] sm:$0xf] }
 0x167   : > { %v2730_v51 = vor.u32 %v3197_v44, %v2729_v39  ;;  %v4479_v53 = vpack.c.bf16 %v760_v42, %v731_v14  ;;  %v2702_v39 = vor.u32 %v3187_v27, %v2699_v32  ;;  %v2681_v42 = vld [vmem:[%s4158_s16 + $0x8] sm:$0xf]  ;;  %v3185_v14 = vld [vmem:[%s4158_s16 + $0x14] sm:$0xf0]  ;;  %v733_v44 = vadd.f32 %v4370_v41, %v4376_v47 }
 0x168   : > { %v4426_v57 = vpack.c.bf16 %v717_v48, %v4351_v23  ;;  %1333 = vmatpush.bf16.msrb.mxu0 %v2754_v43  ;;  %v2737_v23 = vld [vmem:[%s4158_s16 + $0x80] sm:$0xf]  ;;  %1362 = vmatpush.bf16.msrb.mxu2 %v2746_v25  ;;  %v3195_v48 = vld [vmem:[%s4158_s16 + $0x6c] sm:$0xf]  ;;  %v3192_v43 = vld [vmem:[%s4158_s16 + $0x4c] sm:$0xf0]  ;;  %3500 = vtanh.f32 %v1038_v4  ;;  %v2690_v25 = vor.u32 %v3188_v18, %v2689_v11 }
 0x169   : > { %v2738_v15 = vor.u32 %v3200_v10, %v2737_v23  ;;  %v2734_v55 = vor.u32 %v3195_v48, %v2731_v49  ;;  %v2706_v60 = vor.u32 %v3192_v43, %v2705_v17  ;;  %v3191_v23 = vld [vmem:[%s4158_s16 + $0x4c] sm:$0xf]  ;;  %v2715_v10 = vld [vmem:[%s4158_s16 + $0x58] sm:$0xf0]  ;;  %v856_v48 = vunpack.c.l.bf16 %v4479_v53 }
 0x16a   : > { %v2718_v16 = vor.u32 %v3191_v23, %v2715_v10  ;;  %v3183_v4 = vld [vmem:[%s4158_s16 + $0xc] sm:$0xf]  ;;  %v857_v2 = vunpack.c.h.bf16 %v4479_v53  ;;  %v814_v27 = vld [vmem:[#allocation5 + $0x8] sm:$0xff] }
 0x16b   : > { %v745_v8 = vpop.f32.mrf.mxu2  ;;  %1377 = vmatpush.bf16.msra.mxu3 %v2734_v55 }
 0x16c   : > { %v746_v13 = vadd.f32 %v745_v8, %v4376_v47  ;;  %1334 = vmatpush.bf16.msrb.mxu0 %v2738_v15  ;;  %1363 = vmatpush.bf16.msrb.mxu2 %v2730_v51  ;;  %v2710_v8 = vor.u32 %v3190_v37, %v2707_v62  ;;  %v2683_v51 = vld [vmem:[%s4158_s16 + $0x18] sm:$0xf0] }
 0x16d   : > { %v718_v22 = vpop.f32.mrf.mxu1 }
 0x16e   : > { %v4446_v29 = vpack.c.bf16 %v4380_v50, %v746_v13  ;;  %v719_v31 = vadd.f32 %v718_v22, %v4355_v28  ;;  %v2722_v50 = vor.u32 %v3196_v34, %v2721_v33  ;;  %v2723_v28 = vld [vmem:[%s4158_s16 + $0x70] sm:$0xf0]  ;;  %v858_v13 = vunpack.c.l.bf16 %v4463_v5  ;;  %v3184_v33 = vld [vmem:[%s4158_s16 + $0xc] sm:$0xf0]  ;;  %v1079_v34 = vpop.f32.mrf.mxu3  ;;  %v3501_v43 = vpop.eup %3500 }
 0x16f   : > { %1378 = vmatpush.bf16.msra.mxu3 %v2718_v16  ;;  %v2674_v49 = vor.u32 %v3184_v33, %v2673_v40  ;;  %v1092_v0 = vmul.f32 0.5, %v3501_v43 }
 0x170   : > { %v4455_v38 = vpack.c.bf16 %v719_v31, %v4358_v30  ;;  %v2726_v30 = vor.u32 %v3194_v35, %v2723_v28  ;;  %1335 = vmatpush.bf16.msrb.mxu0 %v2722_v50  ;;  %v2694_v31 = vor.u32 %v3186_v36, %v2691_v58  ;;  %1364 = vmatpush.bf16.msrb.mxu2 %v2714_v9  ;;  %v3182_v35 = vld [vmem:[%s4158_s16 + $0x4] sm:$0xf]  ;;  %v2675_v50 = vld [vmem:[%s4158_s16 + $0x10] sm:$0xf0] }
 0x171   : > { %v1040_v28 = vadd.f32 %v1039_v21, %v858_v13  ;;  %v2678_v17 = vor.u32 %v3182_v35, %v2675_v50  ;;  %v813_v9 = vld [vmem:[#allocation5] sm:$0xff]  ;;  %v1094_v11 = vadd.f32 0.5, %v1092_v0 }
 0x172   : > { %1349 = vmatpush.bf16.msrb.mxu1 %v2726_v30  ;;  %v762_v30 = vadd.f32 %v4345_v20, %v4348_v52  ;;  %v2686_v52 = vor.u32 %v3183_v4, %v2683_v51 }
 0x173   : > { %v747_v59 = vpop.f32.mrf.mxu2  ;;  %1379 = vmatpush.bf16.msra.mxu3 %v2702_v39 }
 0x174   : > { %v748_v3 = vadd.f32 %v747_v59, %v4376_v47  ;;  %1336 = vmatpush.bf16.msrb.mxu0 %v2706_v60  ;;  %v859_v59 = vunpack.c.h.bf16 %v4463_v5  ;;  %v2682_v60 = vor.u32 %v3185_v14, %v2681_v42  ;;  %v782_v47 = vpack.c.bf16 %v762_v30, %v733_v44 }
 0x175   : > { %v1051_v15 = vpop.f32.mrf.mxu1 }
 0x176   : > { %v4486_v22 = vpack.c.bf16 %v4389_v61, %v748_v3  ;;  %v1052_v24 = vadd.f32 %v1051_v15, %v855_v6  ;;  %1350 = vmatpush.bf16.msrb.mxu1 %v2710_v8  ;;  %v2698_v61 = vor.u32 %v3189_v26, %v2697_v19  ;;  %v1080_v6 = vadd.f32 %v1079_v34, %v857_v2  ;;  %v1081_v8 = vpop.f32.mrf.mxu3  ;;  %v3243_v2 = vld [vmem:[%s4158_s16 + $0xec] sm:$0xf] }
 0x177   : > { %1380 = vmatpush.bf16.msra.mxu3 %v2686_v52  ;;  %v860_v23 = vunpack.c.l.bf16 %v782_v47  ;;  %v861_v13 = vunpack.c.h.bf16 %v782_v47  ;;  %v2915_v52 = vld [vmem:[%s4158_s16 + $0xf0] sm:$0xf0]  ;;  %v3245_v47 = vld [vmem:[%s4158_s16 + $0xf4] sm:$0xf0] }
 0x178   : > { %3502 = vtanh.f32 %v1052_v24  ;;  %1337 = vmatpush.bf16.msrb.mxu0 %v2690_v25  ;;  %1365 = vmatpush.bf16.msrb.mxu2 %v2698_v61 }
 0x179   : > { %3504 = vtanh.f32 %v1040_v28  ;;  %v1082_v36 = vadd.f32 %v1081_v8, %v861_v13  ;;  %v3240_v8 = vld [vmem:[%s4158_s16 + $0xcc] sm:$0xf0]  ;;  %v3241_v13 = vld [vmem:[%s4158_s16 + $0xd4] sm:$0xf0] }
 0x17a   : > { %1351 = vmatpush.bf16.msrb.mxu1 %v2694_v31 }
 0x17b   : > { %v1065_v55 = vpop.f32.mrf.mxu2 }
 0x17c   : > { %v1066_v37 = vadd.f32 %v1065_v55, %v856_v48  ;;  %1338 = vmatpush.bf16.msrb.mxu0 %v2674_v49  ;;  %1366 = vmatpush.bf16.msrb.mxu2 %v2682_v60  ;;  %v3242_v60 = vld [vmem:[%s4158_s16 + $0xe4] sm:$0xf] }
 0x17d   : > { %v1053_v20 = vpop.f32.mrf.mxu1 }
 0x17e   : > { %v3503_v41 = vpop.eup %3502  ;;  %3506 = vtanh.f32 %v1066_v37  ;;  %v1054_v62 = vadd.f32 %v1053_v20, %v859_v59  ;;  %1352 = vmatpush.bf16.msrb.mxu1 %v2678_v17  ;;  %v2913_v37 = vld [vmem:[%s4158_s16 + $0xe0] sm:$0xf]  ;;  %v3244_v59 = vld [vmem:[%s4158_s16 + $0xec] sm:$0xf0] }
 0x17f   : > { %v1096_v3 = vmul.f32 0.5, %v3503_v41  ;;  %v3505_v10 = vpop.eup %3504  ;;  %v2914_v20 = vor.u32 %v3244_v59, %v2913_v37  ;;  %v2921_v41 = vld [vmem:[%s4158_s16 + $0xe8] sm:$0xf]  ;;  %v3226_v37 = vld [vmem:[%s4158_s16 + $0x64] sm:$0xf] }
 0x180   : > { %3508 = vtanh.f32 %v1054_v62  ;;  %v1093_v24 = vmul.f32 0.5, %v3505_v10  ;;  %v2918_v62 = vor.u32 %v3242_v60, %v2915_v52  ;;  %v2922_v0 = vor.u32 %v3245_v47, %v2921_v41  ;;  %v2899_v10 = vld [vmem:[%s4158_s16 + $0xd0] sm:$0xf0]  ;;  %v3229_v52 = vld [vmem:[%s4158_s16 + $0x74] sm:$0xf0] }
 0x181   : > { %v1098_v5 = vadd.f32 0.5, %v1096_v3  ;;  %3510 = vtanh.f32 %v1080_v6  ;;  %v2923_v3 = vld [vmem:[%s4158_s16 + $0xf8] sm:$0xf0]  ;;  %1635 = vmatpush.bf16.msra.mxu0 %v2914_v20  ;;  %v2851_v60 = vld [vmem:[%s4158_s16 + $0x70] sm:$0xf0] }
 0x182   : > { %v1095_v32 = vadd.f32 0.5, %v1093_v24  ;;  %v2926_v6 = vor.u32 %v3243_v2, %v2923_v3  ;;  %1649 = vmatpush.bf16.msra.mxu1 %v2918_v62  ;;  %1663 = vmatpush.bf16.msra.mxu2 %v2922_v0  ;;  %v3234_v24 = vld [vmem:[%s4158_s16 + $0xa4] sm:$0xf]  ;;  %v2857_v20 = vld [vmem:[%s4158_s16 + $0x68] sm:$0xf]  ;;  %v2854_v41 = vor.u32 %v3226_v37, %v2851_v60  ;;  %v1157_v3 = vunpack.c.l.bf16 %v4374_v46 }
 0x183   : > { %v1067_v15 = vpop.f32.mrf.mxu2  ;;  %v1104_v58 = vmul.f32 %v1098_v5, %v813_v9  ;;  %v2897_v5 = vld [vmem:[%s4158_s16 + $0xc0] sm:$0xf]  ;;  %v3238_v9 = vld [vmem:[%s4158_s16 + $0xc4] sm:$0xf]  ;;  %v2858_v47 = vor.u32 %v3229_v52, %v2857_v20  ;;  %v3227_v62 = vld [vmem:[%s4158_s16 + $0x6c] sm:$0xf] }
 0x184   : > { %v3507_v16 = vpop.eup %3506  ;;  %v1068_v18 = vadd.f32 %v1067_v15, %v860_v23  ;;  %1677 = vmatpush.bf16.msrb.mxu3 %v2926_v6  ;;  %v2898_v23 = vor.u32 %v3240_v8, %v2897_v5  ;;  %v2902_v15 = vor.u32 %v3238_v9, %v2899_v10  ;;  %v2859_v0 = vld [vmem:[%s4158_s16 + $0x78] sm:$0xf0]  ;;  %v1158_v6 = vunpack.c.h.bf16 %v4374_v46  ;;  %v2833_v5 = vld [vmem:[%s4158_s16 + $0x40] sm:$0xf]  ;;  %v3224_v8 = vld [vmem:[%s4158_s16 + $0x4c] sm:$0xf0] }
 0x185   : > { %v1106_v53 = vmul.f32 %v3507_v16, %v1094_v11  ;;  %v2905_v11 = vld [vmem:[%s4158_s16 + $0xc8] sm:$0xf]  ;;  %v2862_v2 = vor.u32 %v3227_v62, %v2859_v0  ;;  %v3222_v9 = vld [vmem:[%s4158_s16 + $0x44] sm:$0xf]  ;;  %v3217_v20 = vld [vmem:[%s4158_s16 + $0x14] sm:$0xf0] }
 0x186   : > { %v3509_v21 = vpop.eup %3508  ;;  %3512 = vtanh.f32 %v1068_v18  ;;  %v2906_v16 = vor.u32 %v3241_v13, %v2905_v11  ;;  %v3239_v18 = vld [vmem:[%s4158_s16 + $0xcc] sm:$0xf]  ;;  %1636 = vmatpush.bf16.msra.mxu0 %v2898_v23  ;;  %1650 = vmatpush.bf16.msra.mxu1 %v2902_v15  ;;  %v2834_v11 = vor.u32 %v3224_v8, %v2833_v5  ;;  %v2835_v13 = vld [vmem:[%s4158_s16 + $0x50] sm:$0xf0]  ;;  %v2841_v15 = vld [vmem:[%s4158_s16 + $0x48] sm:$0xf] }
 0x187   : > { %v4507_v25 = vadd.f32 %v1106_v53, %v1104_v58  ;;  %v1097_v19 = vmul.f32 0.5, %v3509_v21  ;;  %3514 = vtanh.f32 %v1082_v36  ;;  %v3511_v31 = vpop.eup %3510  ;;  %v2907_v36 = vld [vmem:[%s4158_s16 + $0xd8] sm:$0xf0]  ;;  %v2881_v53 = vld [vmem:[%s4158_s16 + $0xa0] sm:$0xf]  ;;  %v2838_v46 = vor.u32 %v3222_v9, %v2835_v13 }
 0x188   : > { %v1100_v61 = vmul.f32 0.5, %v3511_v31  ;;  %v2910_v58 = vor.u32 %v3239_v18, %v2907_v36  ;;  %1664 = vmatpush.bf16.msra.mxu2 %v2906_v16  ;;  %v3236_v21 = vld [vmem:[%s4158_s16 + $0xac] sm:$0xf0]  ;;  %v3237_v31 = vld [vmem:[%s4158_s16 + $0xb4] sm:$0xf0]  ;;  %v1160_v9 = vunpack.c.h.bf16 %v4382_v54 }
 0x189   : > { %v1099_v26 = vadd.f32 0.5, %v1097_v19  ;;  %3516 = vtanh.f32 %v4507_v25  ;;  %v2882_v19 = vor.u32 %v3236_v21, %v2881_v53  ;;  %v3225_v16 = vld [vmem:[%s4158_s16 + $0x54] sm:$0xf0]  ;;  %v3223_v53 = vld [vmem:[%s4158_s16 + $0x4c] sm:$0xf] }
 0x18a   : > { %v1102_v39 = vadd.f32 0.5, %v1100_v61  ;;  %1678 = vmatpush.bf16.msrb.mxu3 %v2910_v58  ;;  %v2842_v58 = vor.u32 %v3225_v16, %v2841_v15  ;;  %v2843_v21 = vld [vmem:[%s4158_s16 + $0x58] sm:$0xf0]  ;;  %v2809_v60 = vld [vmem:[%s4158_s16 + $0x8] sm:$0xf]  ;;  %v1163_v15 = vunpack.c.l.bf16 %v4391_v63 }
 0x18b   : > { %v1105_v33 = vmul.f32 %v1099_v26, %v814_v27  ;;  %v2883_v26 = vld [vmem:[%s4158_s16 + $0xb0] sm:$0xf0]  ;;  %v2889_v27 = vld [vmem:[%s4158_s16 + $0xa8] sm:$0xf]  ;;  %1637 = vmatpush.bf16.msra.mxu0 %v2882_v19  ;;  %v2817_v19 = vld [vmem:[%s4158_s16 + $0x20] sm:$0xf] }
 0x18c   : > { %v3513_v40 = vpop.eup %3512  ;;  %v3215_v0 = vld [vmem:[%s4158_s16 + $0xc] sm:$0xf]  ;;  %v3276_v13 = vld [vmem:[%s4158_s16 + $0xec] sm:$0xf0] }
 0x18d   : > { %v1107_v34 = vmul.f32 %v3513_v40, %v1095_v32  ;;  %v3515_v35 = vpop.eup %3514  ;;  %v2886_v32 = vor.u32 %v3234_v24, %v2883_v26  ;;  %v2890_v40 = vor.u32 %v3237_v31, %v2889_v27  ;;  %v2846_v24 = vor.u32 %v3223_v53, %v2843_v21  ;;  %v3220_v26 = vld [vmem:[%s4158_s16 + $0x2c] sm:$0xf0]  ;;  %v3218_v27 = vld [vmem:[%s4158_s16 + $0x24] sm:$0xf] }
 0x18e   : > { %v1101_v42 = vmul.f32 0.5, %v3515_v35  ;;  %v2865_v35 = vld [vmem:[%s4158_s16 + $0x80] sm:$0xf]  ;;  %v2818_v31 = vor.u32 %v3220_v26, %v2817_v19 }
 0x18f   : > { %v4510_v50 = vadd.f32 %v1107_v34, %v1105_v33  ;;  %v3517_v28 = vpop.eup %3516  ;;  %v3235_v33 = vld [vmem:[%s4158_s16 + $0xac] sm:$0xf]  ;;  %v2891_v34 = vld [vmem:[%s4158_s16 + $0xb8] sm:$0xf0]  ;;  %1651 = vmatpush.bf16.msra.mxu1 %v2886_v32  ;;  %1665 = vmatpush.bf16.msra.mxu2 %v2890_v40  ;;  %v2819_v32 = vld [vmem:[%s4158_s16 + $0x30] sm:$0xf0] }
 0x190   : > { %v1112_v14 = vmul.f32 %v3517_v28, %v1102_v39  ;;  %v1103_v30 = vadd.f32 0.5, %v1101_v42  ;;  %v2894_v61 = vor.u32 %v3235_v33, %v2891_v34  ;;  %v3232_v28 = vld [vmem:[%s4158_s16 + $0x8c] sm:$0xf0]  ;;  %v3230_v39 = vld [vmem:[%s4158_s16 + $0x84] sm:$0xf]  ;;  %v2822_v34 = vor.u32 %v3218_v27, %v2819_v32 }
 0x191   : > { %3518 = vtanh.f32 %v4510_v50  ;;  %v2866_v42 = vor.u32 %v3232_v28, %v2865_v35  ;;  %v2825_v40 = vld [vmem:[%s4158_s16 + $0x28] sm:$0xf]  ;;  %v3221_v33 = vld [vmem:[%s4158_s16 + $0x34] sm:$0xf0]  ;;  %v3219_v35 = vld [vmem:[%s4158_s16 + $0x2c] sm:$0xf] }
 0x192   : > { %v1114_v49 = vpack.c.bf16 %v1112_v14, %v1112_v14  ;;  %1679 = vmatpush.bf16.msrb.mxu3 %v2894_v61  ;;  %v2826_v61 = vor.u32 %v3221_v33, %v2825_v40  ;;  %v2827_v28 = vld [vmem:[%s4158_s16 + $0x38] sm:$0xf0] }
 0x193   : > { %1638 = vmatpush.bf16.msra.mxu0 %v2866_v42  ;;  %v2830_v42 = vor.u32 %v3219_v35, %v2827_v28 }
 0x194   : > { %v1167_v55 = vunpack.c.l.b16 %v1114_v49 }
 0x197   : > { %v3519_v44 = vpop.eup %3518 }
 0x198   : > { %v1113_v48 = vmul.f32 %v3519_v44, %v1103_v30  ;;  %v2873_v30 = vld [vmem:[%s4158_s16 + $0x88] sm:$0xf]  ;;  %v3233_v44 = vld [vmem:[%s4158_s16 + $0x94] sm:$0xf0] }
 0x199   : > { %v2874_v49 = vor.u32 %v3233_v44, %v2873_v30  ;;  %v1161_v44 = vunpack.c.l.bf16 %v4385_v56 }
 0x19a   : > { %v1115_v4 = vpack.c.bf16 %v1113_v48, %v1113_v48  ;;  %v3293_v51 = vpack.c.bf16 %v1113_v48, %v1112_v14  ;;  %v2867_v14 = vld [vmem:[%s4158_s16 + $0x90] sm:$0xf0] }
 0x19b   : > { %v2870_v48 = vor.u32 %v3230_v39, %v2867_v14  ;;  %1666 = vmatpush.bf16.msra.mxu2 %v2874_v49  ;;  %v1159_v39 = vunpack.c.l.bf16 %v4382_v54  ;;  %v2801_v49 = vld [vmem:[%s4158_s16] sm:$0xf] }
 0x19c   : > { %3294 = vst [vmem:[#allocation3 + $0x10] sm:$0xff] %v3293_v51   ;;  %v1168_v17 = vunpack.c.l.b16 %v1115_v4  ;;  %v3231_v4 = vld [vmem:[%s4158_s16 + $0x8c] sm:$0xf]  ;;  %v2875_v51 = vld [vmem:[%s4158_s16 + $0x98] sm:$0xf0] }
 0x19d   : > { %1652 = vmatpush.bf16.msra.mxu1 %v2870_v48  ;;  %v1162_v48 = vunpack.c.h.bf16 %v4385_v56  ;;  %v2810_v56 = vor.u32 %v3217_v20, %v2809_v60  ;;  %v3025_v60 = vld [vmem:[%s4158_s16 + $0xc0] sm:$0xf]  ;;  %v3272_v20 = vld [vmem:[%s4158_s16 + $0xcc] sm:$0xf0] }
 0x19e   : > { %v1169_v43 = vpack.c.b16 %v1168_v17, %v1167_v55  ;;  %v2878_v55 = vor.u32 %v3231_v4, %v2875_v51  ;;  %v2849_v17 = vld [vmem:[%s4158_s16 + $0x60] sm:$0xf]  ;;  %v3216_v4 = vld [vmem:[%s4158_s16 + $0xc] sm:$0xf0]  ;;  %v3214_v51 = vld [vmem:[%s4158_s16 + $0x4] sm:$0xf] }
 0x19f   : > { %1667 = vmatpush.bf16.msra.mxu2 %v2858_v47  ;;  %v2802_v37 = vor.u32 %v3216_v4, %v2801_v49 }
 0x1a0   : > { %1339 = vmatmul.bf16.vlgmr.msrb.gmra.mxu0 %v1169_v43  ;;  %1353 = vmatmul.bf16.vlgmr.msrb.gmra.mxu1 %v1169_v43 }
 0x1a1   : > { %1367 = vmatmul.bf16.vlgmr.msrb.gmra.mxu2 %v1169_v43  ;;  %1381 = vmatmul.bf16.vlgmr.msra.gmra.mxu3 %v1169_v43  ;;  %v3228_v43 = vld [vmem:[%s4158_s16 + $0x6c] sm:$0xf0] }
 0x1a2   : > { %1680 = vmatpush.bf16.msrb.mxu3 %v2878_v55  ;;  %v2850_v59 = vor.u32 %v3228_v43, %v2849_v17  ;;  %1653 = vmatpush.bf16.msra.mxu1 %v2854_v41 }
 0x1a3   : > { %1668 = vmatpush.bf16.msra.mxu2 %v2842_v58 }
 0x1a4   : > { %1639 = vmatpush.bf16.msra.mxu0 %v2850_v59  ;;  %v2803_v59 = vld [vmem:[%s4158_s16 + $0x10] sm:$0xf0] }
 0x1a5   : > { %v2806_v62 = vor.u32 %v3214_v51, %v2803_v59 }
 0x1a6   : > { %1681 = vmatpush.bf16.msrb.mxu3 %v2862_v2  ;;  %1654 = vmatpush.bf16.msra.mxu1 %v2838_v46  ;;  %v2811_v2 = vld [vmem:[%s4158_s16 + $0x18] sm:$0xf0]  ;;  %v1164_v46 = vunpack.c.h.bf16 %v4391_v63 }
 0x1a7   : > { %1669 = vmatpush.bf16.msra.mxu2 %v2826_v61 }
 0x1a8   : > { %1640 = vmatpush.bf16.msra.mxu0 %v2834_v11  ;;  %v3041_v11 = vld [vmem:[%s4158_s16 + $0xe0] sm:$0xf] }
 0x1a9   : > { %v3042_v16 = vor.u32 %v3276_v13, %v3041_v11 }
 0x1aa   : > { %1682 = vmatpush.bf16.msrb.mxu3 %v2846_v24  ;;  %1655 = vmatpush.bf16.msra.mxu1 %v2822_v34 }
 0x1ab   : > { %1670 = vmatpush.bf16.msra.mxu2 %v2810_v56  ;;  %v2993_v56 = vld [vmem:[%s4158_s16 + $0x80] sm:$0xf] }
 0x1ac   : > { %1641 = vmatpush.bf16.msra.mxu0 %v2818_v31 }
 0x1ae   : > { %1683 = vmatpush.bf16.msrb.mxu3 %v2830_v42  ;;  %1656 = vmatpush.bf16.msra.mxu1 %v2806_v62 }
 0x1b0   : > { %1642 = vmatpush.bf16.msra.mxu0 %v2802_v37 }
 0x1b4   : > { %1939 = vmatpush.bf16.msrb.mxu0 %v3042_v16  ;;  %v3260_v16 = vld [vmem:[%s4158_s16 + $0x6c] sm:$0xf0] }
 0x21d   : > { %v1340_v23 = vpop.f32.mrf.mxu0  ;;  %v1354_v10 = vpop.f32.mrf.mxu1 }
 0x21e   : > { %v1341_v18 = vadd.f32 %v1340_v23, %v1157_v3  ;;  %v1355_v36 = vadd.f32 %v1354_v10, %v1158_v6  ;;  %v2814_v6 = vor.u32 %v3215_v0, %v2811_v2  ;;  %v3264_v0 = vld [vmem:[%s4158_s16 + $0x8c] sm:$0xf0] }
 0x21f   : > { %v2994_v2 = vor.u32 %v3264_v0, %v2993_v56  ;;  %v3261_v0 = vld [vmem:[%s4158_s16 + $0x74] sm:$0xf0] }
 0x220   : > { %3520 = vtanh.f32 %v1341_v18  ;;  %1684 = vmatpush.bf16.msrb.mxu3 %v2814_v6  ;;  %v3043_v6 = vld [vmem:[%s4158_s16 + $0xf0] sm:$0xf0] }
 0x221   : > { %3522 = vtanh.f32 %v1355_v36 }
 0x224   : > { %v1368_v14 = vpop.f32.mrf.mxu2  ;;  %v1382_v30 = vpop.f32.mrf.mxu3 }
 0x225   : > { %v1369_v55 = vadd.f32 %v1368_v14, %v1159_v39  ;;  %v1342_v17 = vpop.f32.mrf.mxu0  ;;  %v1356_v43 = vpop.f32.mrf.mxu1  ;;  %v1383_v10 = vadd.f32 %v1382_v30, %v1160_v9  ;;  %v3277_v9 = vld [vmem:[%s4158_s16 + $0xf4] sm:$0xf0] }
 0x226   : > { %v3521_v52 = vpop.eup %3520  ;;  %v1343_v41 = vadd.f32 %v1342_v17, %v1161_v44  ;;  %v1357_v47 = vadd.f32 %v1356_v43, %v1162_v48 }
 0x227   : > { %v3523_v3 = vpop.eup %3522  ;;  %3524 = vtanh.f32 %v1369_v55  ;;  %v1395_v5 = vmul.f32 0.5, %v3521_v52  ;;  %v3026_v52 = vor.u32 %v3272_v20, %v3025_v60  ;;  %v2929_v60 = vld [vmem:[%s4158_s16] sm:$0xf]  ;;  %v3248_v20 = vld [vmem:[%s4158_s16 + $0xc] sm:$0xf0] }
 0x228   : > { %v1399_v8 = vmul.f32 0.5, %v3523_v3  ;;  %3526 = vtanh.f32 %v1343_v41  ;;  %v3009_v41 = vld [vmem:[%s4158_s16 + $0xa0] sm:$0xf]  ;;  %v3274_v3 = vld [vmem:[%s4158_s16 + $0xe4] sm:$0xf] }
 0x229   : > { %3528 = vtanh.f32 %v1357_v47  ;;  %v1397_v18 = vadd.f32 0.5, %v1395_v5  ;;  %1940 = vmatpush.bf16.msrb.mxu0 %v3026_v52  ;;  %v3268_v47 = vld [vmem:[%s4158_s16 + $0xac] sm:$0xf0]  ;;  %v3049_v5 = vld [vmem:[%s4158_s16 + $0xe8] sm:$0xf]  ;;  %v2930_v52 = vor.u32 %v3248_v20, %v2929_v60 }
 0x22a   : > { %v1401_v23 = vadd.f32 0.5, %v1399_v8  ;;  %3530 = vtanh.f32 %v1383_v10  ;;  %v3010_v62 = vor.u32 %v3268_v47, %v3009_v41  ;;  %v3046_v8 = vor.u32 %v3274_v3, %v3043_v6  ;;  %v3051_v10 = vld [vmem:[%s4158_s16 + $0xf8] sm:$0xf0]  ;;  %v3258_v41 = vld [vmem:[%s4158_s16 + $0x64] sm:$0xf] }
 0x22b   : > { %v3050_v11 = vor.u32 %v3277_v9, %v3049_v5  ;;  %v2979_v47 = vld [vmem:[%s4158_s16 + $0x70] sm:$0xf0]  ;;  %v2987_v3 = vld [vmem:[%s4158_s16 + $0x78] sm:$0xf0]  ;;  %v1461_v9 = vunpack.c.l.bf16 %v4394_v1 }
 0x22c   : > { %v1370_v36 = vpop.f32.mrf.mxu2  ;;  %v1384_v58 = vpop.f32.mrf.mxu3  ;;  %v1407_v54 = vmul.f32 %v1401_v23, %v4507_v25  ;;  %v3275_v23 = vld [vmem:[%s4158_s16 + $0xec] sm:$0xf]  ;;  %1953 = vmatpush.bf16.msrb.mxu1 %v3046_v8  ;;  %v2982_v56 = vor.u32 %v3258_v41, %v2979_v47  ;;  %v3289_v8 = vld [vmem:[%s4169_s27 + $0x38] sm:$0xff] }
 0x22d   : > { %v3525_v53 = vpop.eup %3524  ;;  %v1371_v21 = vadd.f32 %v1370_v36, %v1163_v15  ;;  %v1385_v19 = vadd.f32 %v1384_v58, %v1164_v46  ;;  %1941 = vmatpush.bf16.msrb.mxu0 %v3010_v62  ;;  %v3054_v13 = vor.u32 %v3275_v23, %v3051_v10  ;;  %v2977_v15 = vld [vmem:[%s4158_s16 + $0x60] sm:$0xf]  ;;  %1967 = vmatpush.bf16.msrb.mxu2 %v3050_v11  ;;  %v3270_v36 = vld [vmem:[%s4158_s16 + $0xc4] sm:$0xf]  ;;  %v3027_v46 = vld [vmem:[%s4158_s16 + $0xd0] sm:$0xf0]  ;;  %v1462_v23 = vunpack.c.h.bf16 %v4394_v1 }
 0x22e   : > { %v1409_v24 = vmul.f32 %v3525_v53, %v1397_v18  ;;  %v3527_v26 = vpop.eup %3526  ;;  %v2978_v18 = vor.u32 %v3260_v16, %v2977_v15  ;;  %v3033_v58 = vld [vmem:[%s4158_s16 + $0xc8] sm:$0xf]  ;;  %v3030_v53 = vor.u32 %v3270_v36, %v3027_v46  ;;  %v3254_v10 = vld [vmem:[%s4158_s16 + $0x44] sm:$0xf]  ;;  %v2963_v11 = vld [vmem:[%s4158_s16 + $0x50] sm:$0xf0] }
 0x22f   : > { %3532 = vtanh.f32 %v1371_v21  ;;  %v3529_v27 = vpop.eup %3528  ;;  %v1396_v32 = vmul.f32 0.5, %v3527_v26  ;;  %1981 = vmatpush.bf16.msra.mxu3 %v3054_v13  ;;  %v3273_v21 = vld [vmem:[%s4158_s16 + $0xd4] sm:$0xf0]  ;;  %v2985_v62 = vld [vmem:[%s4158_s16 + $0x68] sm:$0xf] }
 0x230   : > { %v4588_v31 = vadd.f32 %v1409_v24, %v1407_v54  ;;  %v1400_v40 = vmul.f32 0.5, %v3529_v27  ;;  %3534 = vtanh.f32 %v1385_v19  ;;  %v3531_v34 = vpop.eup %3530  ;;  %v3271_v54 = vld [vmem:[%s4158_s16 + $0xcc] sm:$0xf]  ;;  %v3035_v24 = vld [vmem:[%s4158_s16 + $0xd8] sm:$0xf0]  ;;  %v3034_v19 = vor.u32 %v3273_v21, %v3033_v58  ;;  %1954 = vmatpush.bf16.msrb.mxu1 %v3030_v53 }
 0x231   : > { %v1398_v63 = vadd.f32 0.5, %v1396_v32  ;;  %v1403_v28 = vmul.f32 0.5, %v3531_v34  ;;  %1942 = vmatpush.bf16.msrb.mxu0 %v2994_v2  ;;  %v3038_v26 = vor.u32 %v3271_v54, %v3035_v24  ;;  %v2961_v27 = vld [vmem:[%s4158_s16 + $0x40] sm:$0xf]  ;;  %v3256_v32 = vld [vmem:[%s4158_s16 + $0x4c] sm:$0xf0]  ;;  %v2986_v6 = vor.u32 %v3261_v0, %v2985_v62 }
 0x232   : > { %v1402_v33 = vadd.f32 0.5, %v1400_v40  ;;  %3536 = vtanh.f32 %v4588_v31  ;;  %1968 = vmatpush.bf16.msrb.mxu2 %v3034_v19  ;;  %v2962_v40 = vor.u32 %v3256_v32, %v2961_v27  ;;  %v3011_v34 = vld [vmem:[%s4158_s16 + $0xb0] sm:$0xf0]  ;;  %v3259_v2 = vld [vmem:[%s4158_s16 + $0x6c] sm:$0xf]  ;;  %v3288_v24 = vld [vmem:[%s4169_s27 + $0x30] sm:$0xff]  ;;  %v1464_v0 = vunpack.c.h.bf16 %v4397_v7 }
 0x233   : > { %v1405_v30 = vadd.f32 0.5, %v1403_v28  ;;  %1982 = vmatpush.bf16.msra.mxu3 %v3038_v26  ;;  %v3019_v28 = vld [vmem:[%s4158_s16 + $0xb8] sm:$0xf0]  ;;  %v2990_v5 = vor.u32 %v3259_v2, %v2987_v3  ;;  %v2969_v13 = vld [vmem:[%s4158_s16 + $0x48] sm:$0xf]  ;;  %v3285_v2 = vld [vmem:[%s4169_s27 + $0x18] sm:$0xff] }
 0x234   : > { %v1408_v35 = vmul.f32 %v1402_v33, %v4510_v50  ;;  %v3266_v33 = vld [vmem:[%s4158_s16 + $0xa4] sm:$0xf]  ;;  %v3257_v36 = vld [vmem:[%s4158_s16 + $0x54] sm:$0xf0]  ;;  %v3255_v46 = vld [vmem:[%s4158_s16 + $0x4c] sm:$0xf] }
 0x235   : > { %v3533_v61 = vpop.eup %3532  ;;  %1943 = vmatpush.bf16.msrb.mxu0 %v2978_v18  ;;  %v2966_v18 = vor.u32 %v3254_v10, %v2963_v11  ;;  %v2971_v58 = vld [vmem:[%s4158_s16 + $0x58] sm:$0xf0]  ;;  %v2970_v21 = vor.u32 %v3257_v36, %v2969_v13  ;;  %v3250_v19 = vld [vmem:[%s4158_s16 + $0x24] sm:$0xf]  ;;  %v2947_v26 = vld [vmem:[%s4158_s16 + $0x30] sm:$0xf0] }
 0x236   : > { %v1410_v25 = vmul.f32 %v3533_v61, %v1398_v63  ;;  %v3535_v39 = vpop.eup %3534  ;;  %v3017_v63 = vld [vmem:[%s4158_s16 + $0xa8] sm:$0xf]  ;;  %v3014_v61 = vor.u32 %v3266_v33, %v3011_v34  ;;  %v2974_v54 = vor.u32 %v3255_v46, %v2971_v58  ;;  %v2950_v32 = vor.u32 %v3250_v19, %v2947_v26  ;;  %v3251_v33 = vld [vmem:[%s4158_s16 + $0x2c] sm:$0xf]  ;;  %v2955_v34 = vld [vmem:[%s4158_s16 + $0x38] sm:$0xf0] }
 0x237   : > { %v1404_v44 = vmul.f32 0.5, %v3535_v39  ;;  %v2953_v27 = vld [vmem:[%s4158_s16 + $0x28] sm:$0xf] }
 0x238   : > { %v4592_v42 = vadd.f32 %v1410_v25, %v1408_v35  ;;  %v3537_v14 = vpop.eup %3536  ;;  %v3269_v35 = vld [vmem:[%s4158_s16 + $0xb4] sm:$0xf0]  ;;  %v3267_v25 = vld [vmem:[%s4158_s16 + $0xac] sm:$0xf]  ;;  %1955 = vmatpush.bf16.msrb.mxu1 %v3014_v61  ;;  %v2958_v61 = vor.u32 %v3251_v33, %v2955_v34 }
 0x239   : > { %v1415_v48 = vmul.f32 %v3537_v14, %v1405_v30  ;;  %v1406_v49 = vadd.f32 0.5, %v1404_v44  ;;  %1944 = vmatpush.bf16.msrb.mxu0 %v2962_v40  ;;  %v3018_v39 = vor.u32 %v3269_v35, %v3017_v63  ;;  %v3022_v14 = vor.u32 %v3267_v25, %v3019_v28  ;;  %v2945_v30 = vld [vmem:[%s4158_s16 + $0x20] sm:$0xf]  ;;  %v3252_v44 = vld [vmem:[%s4158_s16 + $0x2c] sm:$0xf0]  ;;  %v3286_v41 = vld [vmem:[%s4169_s27 + $0x20] sm:$0xff] }
 0x23a   : > { %3538 = vtanh.f32 %v4592_v42  ;;  %v3253_v40 = vld [vmem:[%s4158_s16 + $0x34] sm:$0xf0]  ;;  %v3287_v35 = vld [vmem:[%s4169_s27 + $0x28] sm:$0xff]  ;;  %v1463_v25 = vunpack.c.l.bf16 %v4397_v7  ;;  %v3282_v19 = vld [vmem:[%s4169_s27] sm:$0xff] }
 0x23b   : > { %v1417_v51 = vpack.c.bf16 %v1415_v48, %v1415_v48  ;;  %1969 = vmatpush.bf16.msrb.mxu2 %v3018_v39  ;;  %1983 = vmatpush.bf16.msra.mxu3 %v3022_v14  ;;  %v2954_v63 = vor.u32 %v3253_v40, %v2953_v27  ;;  %v1465_v14 = vunpack.c.l.bf16 %v4403_v12  ;;  %v3284_v7 = vld [vmem:[%s4169_s27 + $0x10] sm:$0xff] }
 0x23d   : > { %v1471_v43 = vunpack.c.l.b16 %v1417_v51  ;;  %v3001_v51 = vld [vmem:[%s4158_s16 + $0x88] sm:$0xf] }
 0x240   : > { %v3539_v4 = vpop.eup %3538 }
 0x241   : > { %v1416_v55 = vmul.f32 %v3539_v4, %v1406_v49  ;;  %v3262_v49 = vld [vmem:[%s4158_s16 + $0x84] sm:$0xf]  ;;  %v2995_v4 = vld [vmem:[%s4158_s16 + $0x90] sm:$0xf0] }
 0x243   : > { %v1418_v50 = vpack.c.bf16 %v1416_v55, %v1416_v55  ;;  %v3298_v17 = vpack.c.bf16 %v1416_v55, %v1415_v48  ;;  %v2946_v48 = vor.u32 %v3252_v44, %v2945_v30  ;;  %v2998_v55 = vor.u32 %v3262_v49, %v2995_v4  ;;  %v3246_v44 = vld [vmem:[%s4158_s16 + $0x4] sm:$0xf]  ;;  %v2937_v49 = vld [vmem:[%s4158_s16 + $0x8] sm:$0xf] }
 0x244   : > { %v1466_v30 = vunpack.c.h.bf16 %v4403_v12 }
 0x245   : > { %3299 = vst [vmem:[#allocation3] sm:$0xff] %v3298_v17   ;;  %v1472_v37 = vunpack.c.l.b16 %v1418_v50  ;;  %v3265_v50 = vld [vmem:[%s4158_s16 + $0x94] sm:$0xf0]  ;;  %v3263_v17 = vld [vmem:[%s4158_s16 + $0x8c] sm:$0xf]  ;;  %1945 = vmatpush.bf16.msrb.mxu0 %v2946_v48  ;;  %1956 = vmatpush.bf16.msrb.mxu1 %v2998_v55 }
 0x246   : > { %v2931_v48 = vld [vmem:[%s4158_s16 + $0x10] sm:$0xf0] }
 0x247   : > { %v1473_v59 = vpack.c.b16 %v1472_v37, %v1471_v43  ;;  %v3003_v43 = vld [vmem:[%s4158_s16 + $0x98] sm:$0xf0]  ;;  %v3002_v37 = vor.u32 %v3265_v50, %v3001_v51  ;;  %v2934_v50 = vor.u32 %v3246_v44, %v2931_v48 }
 0x249   : > { %1643 = vmatmul.bf16.vlgmr.msra.gmra.mxu0 %v1473_v59  ;;  %1657 = vmatmul.bf16.vlgmr.msra.gmra.mxu1 %v1473_v59 }
 0x24a   : > { %1671 = vmatmul.bf16.vlgmr.msra.gmra.mxu2 %v1473_v59  ;;  %1685 = vmatmul.bf16.vlgmr.msrb.gmra.mxu3 %v1473_v59  ;;  %v3006_v59 = vor.u32 %v3263_v17, %v3003_v43  ;;  %v3249_v17 = vld [vmem:[%s4158_s16 + $0x14] sm:$0xf0]  ;;  %v3247_v43 = vld [vmem:[%s4158_s16 + $0xc] sm:$0xf] }
 0x24b   : > { %1970 = vmatpush.bf16.msrb.mxu2 %v3002_v37  ;;  %1946 = vmatpush.bf16.msrb.mxu0 %v2930_v52  ;;  %v2939_v37 = vld [vmem:[%s4158_s16 + $0x18] sm:$0xf0]  ;;  %v2938_v52 = vor.u32 %v3249_v17, %v2937_v49  ;;  %v1766_v17 = vunpack.c.h.bf16 %v4426_v57  ;;  %s3750_s16 = scalar_lea.hbm %s4829_s17, 128 }
 0x24c   : > { %1984 = vmatpush.bf16.msra.mxu3 %v3006_v59  ;;  %1957 = vmatpush.bf16.msrb.mxu1 %v2982_v56  ;;  %v2942_v12 = vor.u32 %v3247_v43, %v2939_v37  ;;  %p3752_p9 = scmp.lt.s32.totalorder %s3750_s16, %s3746_s29 }
 0x24e   : > { %p3753_p10 = por %p3752_p9, %p3751_p7 }
 0x24f   : > { %1971 = vmatpush.bf16.msrb.mxu2 %v2986_v6  ;;  %2130 = vmatpush.bf16.msra.mxu0 %v3289_v8 }
 0x250   : > { %1985 = vmatpush.bf16.msra.mxu3 %v2990_v5  ;;  %1958 = vmatpush.bf16.msrb.mxu1 %v2966_v18  ;;  %v1467_v5 = vunpack.c.l.bf16 %v4419_v45  ;;  %p3754_p13 = pnand %p3753_p10, %p3749_p6 }
 0x253   : > { %1972 = vmatpush.bf16.msrb.mxu2 %v2970_v21  ;;  %2131 = vmatpush.bf16.msra.mxu0 %v3288_v24 }
 0x254   : > { %1986 = vmatpush.bf16.msra.mxu3 %v2974_v54  ;;  %1959 = vmatpush.bf16.msrb.mxu1 %v2950_v32 }
 0x257   : > { %1973 = vmatpush.bf16.msrb.mxu2 %v2954_v63  ;;  %2132 = vmatpush.bf16.msra.mxu0 %v3287_v35 }
 0x258   : > { %1987 = vmatpush.bf16.msra.mxu3 %v2958_v61  ;;  %1960 = vmatpush.bf16.msrb.mxu1 %v2934_v50  ;;  %v1765_v50 = vunpack.c.l.bf16 %v4426_v57 }
 0x25b   : > { %1974 = vmatpush.bf16.msrb.mxu2 %v2938_v52  ;;  %2133 = vmatpush.bf16.msra.mxu0 %v3286_v41  ;;  %v1768_v52 = vunpack.c.h.bf16 %v4446_v29 }
 0x25c   : > { %1988 = vmatpush.bf16.msra.mxu3 %v2942_v12 }
 0x25f   : > { %2134 = vmatpush.bf16.msra.mxu0 %v3285_v2 }
 0x263   : > { %2135 = vmatpush.bf16.msra.mxu0 %v3284_v7 }
 0x2c6   : > { %v1644_v15 = vpop.f32.mrf.mxu0  ;;  %v1658_v16 = vpop.f32.mrf.mxu1 }
 0x2c7   : > { %v1645_v53 = vadd.f32 %v1644_v15, %v1461_v9  ;;  %v1659_v1 = vadd.f32 %v1658_v16, %v1462_v23  ;;  %v1468_v23 = vunpack.c.h.bf16 %v4419_v45  ;;  %v3283_v45 = vld [vmem:[%s4169_s27 + $0x8] sm:$0xff] }
 0x2c8   : > { %2136 = vmatpush.bf16.msra.mxu0 %v3283_v45 }
 0x2c9   : > { %3540 = vtanh.f32 %v1645_v53 }
 0x2ca   : > { %3542 = vtanh.f32 %v1659_v1 }
 0x2cc   : > { %2137 = vmatpush.bf16.msra.mxu0 %v3282_v19 }
 0x2cd   : > { %v1672_v28 = vpop.f32.mrf.mxu2  ;;  %v1686_v39 = vpop.f32.mrf.mxu3 }
 0x2ce   : > { %v1673_v4 = vadd.f32 %v1672_v28, %v1463_v25  ;;  %v1646_v51 = vpop.f32.mrf.mxu0  ;;  %v1660_v55 = vpop.f32.mrf.mxu1  ;;  %v1687_v6 = vadd.f32 %v1686_v39, %v1464_v0 }
 0x2cf   : > { %v3541_v59 = vpop.eup %3540  ;;  %v1647_v60 = vadd.f32 %v1646_v51, %v1465_v14  ;;  %v1661_v20 = vadd.f32 %v1660_v55, %v1466_v30  ;;  %v3279_v51 = vld [vmem:[#allocation3] sm:$0xff] }
 0x2d0   : > { %v3543_v47 = vpop.eup %3542  ;;  %3544 = vtanh.f32 %v1673_v4  ;;  %v1699_v62 = vmul.f32 0.5, %v3541_v59  ;;  %v3278_v4 = vld [vmem:[#allocation3 + $0x10] sm:$0xff] }
 0x2d1   : > { %v1703_v56 = vmul.f32 0.5, %v3543_v47  ;;  %3546 = vtanh.f32 %v1647_v60  ;;  %v1769_v47 = vunpack.c.l.bf16 %v4455_v38 }
 0x2d2   : > { %3548 = vtanh.f32 %v1661_v20  ;;  %v1701_v8 = vadd.f32 0.5, %v1699_v62  ;;  %v1767_v20 = vunpack.c.l.bf16 %v4446_v29  ;;  %v1770_v62 = vunpack.c.h.bf16 %v4455_v38 }
 0x2d3   : > { %v1705_v3 = vadd.f32 0.5, %v1703_v56  ;;  %3550 = vtanh.f32 %v1687_v6 }
 0x2d5   : > { %v1674_v9 = vpop.f32.mrf.mxu2  ;;  %v1688_v10 = vpop.f32.mrf.mxu3  ;;  %v1711_v15 = vmul.f32 %v1705_v3, %v4588_v31 }
 0x2d6   : > { %v3545_v11 = vpop.eup %3544  ;;  %v1675_v13 = vadd.f32 %v1674_v9, %v1467_v5  ;;  %v1689_v18 = vadd.f32 %v1688_v10, %v1468_v23  ;;  %v1771_v10 = vunpack.c.l.bf16 %v4486_v22 }
 0x2d7   : > { %v1713_v16 = vmul.f32 %v3545_v11, %v1701_v8  ;;  %v3547_v36 = vpop.eup %3546  ;;  %v1772_v11 = vunpack.c.h.bf16 %v4486_v22 }
 0x2d8   : > { %3552 = vtanh.f32 %v1675_v13  ;;  %v3549_v46 = vpop.eup %3548  ;;  %v1700_v53 = vmul.f32 0.5, %v3547_v36 }
 0x2d9   : > { %v4672_v58 = vadd.f32 %v1713_v16, %v1711_v15  ;;  %v1704_v1 = vmul.f32 0.5, %v3549_v46  ;;  %3554 = vtanh.f32 %v1689_v18  ;;  %v3551_v54 = vpop.eup %3550 }
 0x2da   : > { %v1702_v24 = vadd.f32 0.5, %v1700_v53  ;;  %v1707_v32 = vmul.f32 0.5, %v3551_v54 }
 0x2db   : > { %v1706_v21 = vadd.f32 0.5, %v1704_v1  ;;  %3556 = vtanh.f32 %v4672_v58 }
 0x2dc   : > { %v1709_v63 = vadd.f32 0.5, %v1707_v32 }
 0x2dd   : > { %v1712_v26 = vmul.f32 %v1706_v21, %v4592_v42 }
 0x2de   : > { %v3553_v31 = vpop.eup %3552 }
 0x2df   : > { %v1714_v27 = vmul.f32 %v3553_v31, %v1702_v24  ;;  %v3555_v40 = vpop.eup %3554 }
 0x2e0   : > { %v1708_v61 = vmul.f32 0.5, %v3555_v40 }
 0x2e1   : > { %v4678_v33 = vadd.f32 %v1714_v27, %v1712_v26  ;;  %v3557_v34 = vpop.eup %3556 }
 0x2e2   : > { %v1719_v35 = vmul.f32 %v3557_v34, %v1709_v63  ;;  %v1710_v25 = vadd.f32 0.5, %v1708_v61 }
 0x2e3   : > { %3558 = vtanh.f32 %v4678_v33 }
 0x2e4   : > { %v1721_v39 = vpack.c.bf16 %v1719_v35, %v1719_v35 }
 0x2e6   : > { %v1775_v48 = vunpack.c.l.b16 %v1721_v39 }
 0x2e9   : > { %v3559_v28 = vpop.eup %3558 }
 0x2ea   : > { %v1720_v14 = vmul.f32 %v3559_v28, %v1710_v25 }
 0x2ec   : > { %v1722_v30 = vpack.c.bf16 %v1720_v14, %v1720_v14  ;;  %v3303_v44 = vpack.c.bf16 %v1720_v14, %v1719_v35 }
 0x2ee   : > { %3304 = vst [vmem:[#allocation3 + $0x18] sm:$0xff] %v3303_v44   ;;  %v1776_v42 = vunpack.c.l.b16 %v1722_v30 }
 0x2f0   : > { %v1777_v49 = vpack.c.b16 %v1776_v42, %v1775_v48 }
 0x2f2   : > { %1947 = vmatmul.bf16.vlgmr.msrb.gmra.mxu0 %v1777_v49  ;;  %1961 = vmatmul.bf16.vlgmr.msrb.gmra.mxu1 %v1777_v49 }
 0x2f3   : > { %1975 = vmatmul.bf16.vlgmr.msrb.gmra.mxu2 %v1777_v49  ;;  %1989 = vmatmul.bf16.vlgmr.msra.gmra.mxu3 %v1777_v49 }
 0x2f5   : > { %v3280_v55 = vld [vmem:[#allocation3 + $0x18] sm:$0xff] }
 0x302   : > { %2138 = vmatmul.bf16.vlgmr.msra.gmra.mxu0 %v3278_v4 }
 0x312   : > { %2143 = vmatmul.bf16.gmra.mxu0 %v3279_v51 }
 0x322   : > { %2148 = vmatmul.bf16.gmra.mxu0 %v3280_v55 }
 0x36f   : > { %v1948_v43 = vpop.f32.mrf.mxu0  ;;  %v1962_v37 = vpop.f32.mrf.mxu1 }
 0x370   : > { %v1949_v59 = vadd.f32 %v1948_v43, %v1765_v50  ;;  %v1963_v60 = vadd.f32 %v1962_v37, %v1766_v17 }
 0x372   : > { %3560 = vtanh.f32 %v1949_v59 }
 0x373   : > { %3562 = vtanh.f32 %v1963_v60 }
 0x376   : > { %v1976_v12 = vpop.f32.mrf.mxu2  ;;  %v1990_v41 = vpop.f32.mrf.mxu3 }
 0x377   : > { %v1977_v56 = vadd.f32 %v1976_v12, %v1767_v20  ;;  %v1991_v0 = vadd.f32 %v1990_v41, %v1768_v52  ;;  %v1950_v2 = vpop.f32.mrf.mxu0  ;;  %v1964_v57 = vpop.f32.mrf.mxu1 }
 0x378   : > { %v3561_v3 = vpop.eup %3560  ;;  %v1951_v6 = vadd.f32 %v1950_v2, %v1769_v47  ;;  %v1965_v5 = vadd.f32 %v1964_v57, %v1770_v62 }
 0x379   : > { %v3563_v8 = vpop.eup %3562  ;;  %3564 = vtanh.f32 %v1977_v56  ;;  %v2003_v9 = vmul.f32 0.5, %v3561_v3 }
 0x37a   : > { %v2007_v23 = vmul.f32 0.5, %v3563_v8  ;;  %3566 = vtanh.f32 %v1991_v0 }
 0x37b   : > { %3568 = vtanh.f32 %v1951_v6  ;;  %v2005_v38 = vadd.f32 0.5, %v2003_v9 }
 0x37c   : > { %v2009_v29 = vadd.f32 0.5, %v2007_v23  ;;  %3570 = vtanh.f32 %v1965_v5 }
 0x37e   : > { %v1978_v13 = vpop.f32.mrf.mxu2  ;;  %v1992_v7 = vpop.f32.mrf.mxu3  ;;  %v2015_v53 = vmul.f32 %v2009_v29, %v4672_v58 }
 0x37f   : > { %v3565_v15 = vpop.eup %3564  ;;  %v1979_v16 = vadd.f32 %v1978_v13, %v1771_v10  ;;  %v1993_v18 = vadd.f32 %v1992_v7, %v1772_v11  ;;  %v2139_v36 = vpop.f32.mrf.mxu0 }
 0x380   : > { %v3567_v46 = vpop.eup %3566  ;;  %v2017_v1 = vmul.f32 %v3565_v15, %v2005_v38 }
 0x381   : > { %v3569_v45 = vpop.eup %3568  ;;  %3572 = vtanh.f32 %v1979_v16  ;;  %v2011_v22 = vmul.f32 0.5, %v3567_v46 }
 0x382   : > { %v3571_v21 = vpop.eup %3570  ;;  %v2019_v54 = vadd.f32 %v2017_v1, %v2015_v53  ;;  %v2004_v24 = vmul.f32 0.5, %v3569_v45  ;;  %3574 = vtanh.f32 %v1993_v18 }
 0x383   : > { %v2008_v31 = vmul.f32 0.5, %v3571_v21  ;;  %v2013_v61 = vadd.f32 0.5, %v2011_v22 }
 0x384   : > { %3576 = vtanh.f32 %v2019_v54  ;;  %2032 = vst [vmem:[#allocation5] sm:$0xff] %v2019_v54  ;;  %v2006_v26 = vadd.f32 0.5, %v2004_v24 }
 0x385   : > { %v2010_v19 = vadd.f32 0.5, %v2008_v31 }
 0x387   : > { %v3573_v27 = vpop.eup %3572  ;;  %v2141_v32 = vpop.f32.mrf.mxu0  ;;  %v2016_v40 = vmul.f32 %v2010_v19, %v4678_v33 }
 0x388   : > { %v2018_v34 = vmul.f32 %v3573_v27, %v2006_v26  ;;  %v3318_v58 = vpack.c.bf16 %v2141_v32, %v2139_v36  ;;  %v3575_v63 = vpop.eup %3574 }
 0x389   : > { %v2012_v39 = vmul.f32 0.5, %v3575_v63 }
 0x38a   : > { %v3577_v35 = vpop.eup %3576  ;;  %v2020_v25 = vadd.f32 %v2018_v34, %v2016_v40  ;;  %3319 = vst [vmem:[%s4171_s1] sm:$0xff] %v3318_v58  }
 0x38b   : > { %v2023_v28 = vmul.f32 %v3577_v35, %v2013_v61  ;;  %v2014_v30 = vadd.f32 0.5, %v2012_v39 }
 0x38c   : > { %3578 = vtanh.f32 %v2020_v25  ;;  %2033 = vst [vmem:[#allocation5 + $0x8] sm:$0xff] %v2020_v25 }
 0x38f   : > { %v2144_v14 = vpop.f32.mrf.mxu0 }
 0x392   : > { %v3579_v44 = vpop.eup %3578 }
 0x393   : > { %v2024_v48 = vmul.f32 %v3579_v44, %v2014_v30 }
 0x395   : > { %v3308_v33 = vpack.c.bf16 %v2024_v48, %v2023_v28 }
 0x397   : > { %3309 = vst [vmem:[#allocation3 + $0x8] sm:$0xff] %v3308_v33   ;;  %v2146_v42 = vpop.f32.mrf.mxu0 }
 0x398   : > { %3314 = vst [vmem:[#allocation4] sm:$0xff] %v3308_v33   ;;  %v3323_v49 = vpack.c.bf16 %v2146_v42, %v2144_v14 }
 0x39a   : > { %3335 = vst [vmem:[%s4171_s1 + $0x8] sm:$0xff] %v3323_v49  }
 0x39e   : > { %v3281_v4 = vld [vmem:[#allocation3 + $0x8] sm:$0xff] }
 0x39f   : > { %v2149_v51 = vpop.f32.mrf.mxu0  ;;  %2153 = vmatmul.bf16.gmra.mxu0 %v3281_v4 }
 0x3a7   : > { %v2151_v55 = vpop.f32.mrf.mxu0 }
 0x3a8   : > { %v3328_v50 = vpack.c.bf16 %v2151_v55, %v2149_v51 }
 0x3aa   : > { %3336 = vst [vmem:[%s4171_s1 + $0x10] sm:$0xff] %v3328_v50  }
 0x41c   : > { %v2154_v17 = vpop.f32.mrf.mxu0 }
 0x424   : > { %v2156_v43 = vpop.f32.mrf.mxu0 }
 0x425   : > { %v3333_v37 = vpack.c.bf16 %v2156_v43, %v2154_v17 }
 0x427   : > { %3337 = vst [vmem:[%s4171_s1 + $0x18] sm:$0xff] %v3333_v37  }
 0x428   : > { %3757 = shalt.err (!%p3754_p13)
}
 0x429   : > { %s3892_s2 = smov 64   ;;  %s3893_s10 = smov 4  }
 0x42a   : > { %3356 = dma.vmem_to_hbm [thread:$0]  (%p4108_p3), %s2191_s18, 512, %s2193_s0, %s2176_s26, %s3892_s2, %s3892_s2, %s3893_s10  }
 0x42b PF: > { %s4830_s25 = sld [smem:[#allocation20_spill]]  ;;  %p3379_p11 = scmp.ge.s32.totalorder %s3884_s6, 2 }
 0x42d   : > { %p3375_p1 = pnand %p3379_p11, %p4112_p2 }
 0x42f   : > { %p3376_p4 = pneg %p3375_p1 }
 0x431   : > { %s2207_s1 = sand.u32 1, %s4830_s25  }
 0x432   : > { %s2208_s8 = scalar_lea.sflag [#allocation8], %s2207_s1 }
 0x433   : > { %3827 = dma.done.wait (%p3376_p4), %s2208_s8, 512  }
 0x434   : > { %3829 = vsyncadd (%p3376_p4), %s2208_s8, 4294966784  ;;  %s27_s6 = sadd.s32 1, %s3884_s6   ;;  %s4833_s21 = sld [smem:[#allocation21_spill]] }
 0x435   : > { %p4718_p0 = scmp.ge.s32.totalorder %s27_s6, 6   ;;  %s4834_s20 = sld [smem:[#allocation33_spill]] }
 0x436   : > { %s4835_s13 = sld [smem:[#allocation22_spill]]  ;;  %s4843_s18 = smov %s3836_s19 }
 0x437   : > { %s4836_s23 = sld [smem:[#allocation32_spill]]  ;;  %s4847_s28 = smov %s3880_s30 }
 0x438   : > { %s4837_s24 = sld [smem:[#allocation23_spill]] }
 0x439   : > { %s4838_s25 = sld [smem:[#allocation24_spill]] }
 0x43a   : > { %s4839_s26 = sld [smem:[#allocation31_spill]]  ;;  %s4844_s19 = smov %s4833_s21 }
 0x43b   : > { %s4840_s27 = sld [smem:[#allocation27_spill]]  ;;  %s4845_s21 = smov %s3848_s22 }
 0x43c   : > { %s4841_s29 = sld [smem:[#allocation29_spill]]  ;;  %s4846_s22 = smov %s4835_s13 }
 0x43d   : > { %s4842_s5 = sld [smem:[#allocation30_spill]] }
 0x43f   :  { %26 = sbr.rel (!%p4718_p0) target bundleno = 21 (0x15), region = 144 }
 0x443   : > { %s4848_s30 = smov %s4842_s5 }
 0x444   :  { %2214 = vsyncpa [#allocation7], 1 }
 0x445   :  { %2216 = vsyncpa [#allocation7 + $0x1], 1 }
 0x446   :  { %2217 = vsyncpa [#allocation10], 1 }
 0x447   :  { %2219 = vsyncpa [#allocation10 + $0x1], 1 }
 0x448   :  { %2220 = vsyncpa [#allocation13], 1 }
 0x449   :  { %2222 = vsyncpa [#allocation13 + $0x1], 1 }
 0x44a   :  { %2223 = vsyncpa [#allocation8], 1 }
 0x44b   :  { %2225 = vsyncpa [#allocation8 + $0x1], 1 }

</bundles_post_ra>
